<compile_context>
chip_gen: v6e
topology: v6e:2x2x1
jax: 0.10.0
libtpu: 0.0.40
codegen_flags: <defaults>
</compile_context>

<pallas_src>
import functools

import jax
import jax.numpy as jnp
from jax.experimental import pallas as pl
from jax.experimental.pallas import tpu as pltpu


# ---------------------------------------------------------------------------
# In-kernel helpers
# ---------------------------------------------------------------------------
def _layernorm_f32(x, gamma, beta, eps=1e-5):
    """LayerNorm computed in float32 (matches the fp32-cast LayerNorm)."""
    x32 = x.astype(jnp.float32)
    mu = jnp.mean(x32, axis=-1, keepdims=True)
    var = jnp.mean(jnp.square(x32 - mu), axis=-1, keepdims=True)
    y = (x32 - mu) * jax.lax.rsqrt(var + eps)
    return y * gamma + beta


# ---------------------------------------------------------------------------
# Kernel: one grid step = one (batch tile, layer) pair.
# ---------------------------------------------------------------------------
def transformer_kernel(x_ref,
                       ln1_g_ref, ln1_b_ref,
                       wqkv_ref, bqkv_ref,
                       wo_ref, bo_ref,
                       ln2_g_ref, ln2_b_ref,
                       wfc_ref, bfc_ref, wproj_ref, bproj_ref,
                       o_ref, *, n_head):
    layer = pl.program_id(1)

    # Layer 0: load the input tile into the resident f32 carry (the output block).
    @pl.when(layer == 0)
    def _():
        o_ref[...] = x_ref[...].astype(o_ref.dtype)

    x = o_ref[...]                              # (Nb, L, D) f32 carry
    Nb, L, D = x.shape
    T = Nb * L
    hd = D // n_head

    # -------------------- attention branch: x + MHA(LN1(x)) --------------------
    h = _layernorm_f32(x, ln1_g_ref[...], ln1_b_ref[...])
    hb = h.reshape(T, D).astype(jnp.bfloat16)   # bf16 matmul inputs, f32 accum

    # Single fused, lane-dense QKV projection: (T, D) x (D, 3D).
    # Column layout is [Q | K | V]; the 1/sqrt(hd) attention scale is pre-folded
    # into the Q columns/bias at pack time.
    qkv = (jnp.dot(hb, wqkv_ref[...], preferred_element_type=jnp.float32)
           + bqkv_ref[...])

    # Per-head attention (static loop over a small head count; the score / PV
    # matmuls are MXU-batched over the Nb samples of the batch tile).
    head_outs = []
    for hh in range(n_head):
        q = qkv[:, hh * hd:(hh + 1) * hd].reshape(Nb, L, hd).astype(jnp.bfloat16)
        k = qkv[:, D + hh * hd:D + (hh + 1) * hd].reshape(Nb, L, hd).astype(jnp.bfloat16)
        v = qkv[:, 2 * D + hh * hd:2 * D + (hh + 1) * hd].reshape(Nb, L, hd).astype(jnp.bfloat16)

        s = jnp.einsum('nld,nmd->nlm', q, k, preferred_element_type=jnp.float32)
        s = s - jnp.max(s, axis=-1, keepdims=True)
        p = jnp.exp(s)
        p = p * pl.reciprocal(jnp.sum(p, axis=-1, keepdims=True), approx=True)

        head_outs.append(jnp.einsum('nlm,nmd->nld', p.astype(jnp.bfloat16), v,
                                    preferred_element_type=jnp.float32))

    # Concat heads (lane concat) and do ONE output-projection matmul.
    o_heads = jnp.concatenate(head_outs, axis=-1).reshape(T, D)
    attn = (jnp.dot(o_heads.astype(jnp.bfloat16), wo_ref[...],
                    preferred_element_type=jnp.float32) + bo_ref[...])
    x = x + attn.reshape(Nb, L, D)

    # -------------------- MLP branch: x + c_proj(QuickGELU(c_fc(LN2(x)))) ------
    h2 = _layernorm_f32(x, ln2_g_ref[...], ln2_b_ref[...]).reshape(T, D)
    ff = (jnp.dot(h2.astype(jnp.bfloat16), wfc_ref[...],
                  preferred_element_type=jnp.float32) + bfc_ref[...])
    # QuickGELU: x * sigmoid(1.702 x), exact & overflow-safe via tanh (EUP).
    ff = ff * (0.5 * (jnp.tanh(0.851 * ff) + 1.0))
    mlp = (jnp.dot(ff.astype(jnp.bfloat16), wproj_ref[...],
                   preferred_element_type=jnp.float32) + bproj_ref[...])
    x = x + mlp.reshape(Nb, L, D)

    o_ref[...] = x.astype(o_ref.dtype)


# ---------------------------------------------------------------------------
# Wrapper helpers: batch-tile & VMEM-limit selection
# ---------------------------------------------------------------------------
def _pick_batch_tile(N, L, target_rows=256):
    """Largest Nb dividing N with Nb*L <= target_rows; keep >=2 batch-grid steps
    when possible so the 'parallel' axis can shard across 2 TensorCores (v7x)."""
    divisors = [d for d in range(1, N + 1) if N % d == 0]
    fits = [d for d in divisors if d * L <= target_rows] or [1]
    multi = [d for d in fits if N // d >= 2]
    return max(multi) if multi else max(fits)


def _pick_vmem_limit(default_bytes=48 * 1024 * 1024, frac=0.80):
    """~80% of the chip's physical VMEM (128 MiB v5e/v6e, 64 MiB v7x)."""
    try:
        info = pltpu.get_tpu_info()
        cap = getattr(info, "vmem_capacity_bytes", None)
        if cap:
            return int(cap * frac)
    except Exception:
        pass
    return default_bytes


# ---------------------------------------------------------------------------
# Wrapper: one pallas_call for the whole Transformer.
# ---------------------------------------------------------------------------
def transformer_forward(x_lnd, packed, n_head, *, batch_tile=None, target_rows=256):
    """PyTorch-layout entry point: x_lnd is (L, N, D) = (seq, batch, width)."""
    L, N, D = x_lnd.shape
    num_layers = packed['wfc'].shape[0]
    F = packed['wfc'].shape[-1]
    orig_dtype = x_lnd.dtype

    Nb = batch_tile if batch_tile is not None else _pick_batch_tile(N, L, target_rows)
    assert N % Nb == 0, "batch tile must divide the batch size"

    # Batch-first layout inside the kernel; force an f32 residual carry
    # (preserves fp32 LayerNorm/residual semantics even for bf16 callers).
    x_nld = jnp.transpose(x_lnd, (1, 0, 2)).astype(jnp.float32)

    def per_layer(*dims):                        # (layers, *dims) per-layer slabs
        zeros = (0,) * len(dims)
        return pl.BlockSpec((None,) + dims, lambda b, l, _z=zeros: (l,) + _z)

    in_specs = [
        pl.BlockSpec((Nb, L, D), lambda b, l: (b, 0, 0)),   # x (read once per batch tile)
        per_layer(1, D), per_layer(1, D),                    # ln1 gamma / beta
        per_layer(D, 3 * D), per_layer(1, 3 * D),            # fused QKV weight / bias
        per_layer(D, D), per_layer(1, D),                    # out-proj weight / bias
        per_layer(1, D), per_layer(1, D),                    # ln2 gamma / beta
        per_layer(D, F), per_layer(1, F),                    # c_fc
        per_layer(F, D), per_layer(1, D),                    # c_proj
    ]
    out_specs = pl.BlockSpec((Nb, L, D), lambda b, l: (b, 0, 0))

    out_nld = pl.pallas_call(
        functools.partial(transformer_kernel, n_head=n_head),
        grid=(N // Nb, num_layers),              # (batch "parallel", layer "arbitrary")
        in_specs=in_specs,
        out_specs=out_specs,
        out_shape=jax.ShapeDtypeStruct((N, L, D), jnp.float32),
        input_output_aliases={0: 0},             # residual stream updates in place
        compiler_params=pltpu.CompilerParams(
            dimension_semantics=("parallel", "arbitrary"),
            vmem_limit_bytes=_pick_vmem_limit()),
    )(x_nld,
      packed['ln1_g'], packed['ln1_b'],
      packed['wqkv'], packed['bqkv'],
      packed['wo'], packed['bo'],
      packed['ln2_g'], packed['ln2_b'],
      packed['wfc'], packed['bfc'], packed['wproj'], packed['bproj'])

    return jnp.transpose(out_nld, (1, 0, 2)).astype(orig_dtype)   # back to (L, N, D)


# ---------------------------------------------------------------------------
# Parameter creation / packing
# ---------------------------------------------------------------------------
def init_params(key, width, layers):
    """Deterministic synthetic parameters (PyTorch-equivalent shapes; all
    weights stored pre-transposed so math is plain `x @ W`)."""
    D = width
    params = []
    for layer in range(layers):
        ks = jax.random.split(jax.random.fold_in(key, layer), 12)
        nrm = lambda k, shape, s=0.02: (s * jax.random.normal(k, shape)).astype(jnp.float32)
        params.append(dict(
            ln1_g=1.0 + nrm(ks[0], (1, D)), ln1_b=nrm(ks[1], (1, D)),
            wq_t=nrm(ks[2], (D, D)), bq=nrm(ks[3], (1, D), 0.01),
            wk_t=nrm(ks[4], (D, D)), bk=nrm(ks[5], (1, D), 0.01),
            wv_t=nrm(ks[6], (D, D)), bv=nrm(ks[7], (1, D), 0.01),
            wo_t=nrm(ks[8], (D, D)), bo=nrm(ks[9], (1, D), 0.01),
            ln2_g=1.0 + nrm(ks[10], (1, D)), ln2_b=nrm(ks[11], (1, D)),
            wfc_t=nrm(jax.random.fold_in(ks[2], 1), (D, 4 * D)),
            bfc=nrm(jax.random.fold_in(ks[3], 1), (1, 4 * D), 0.01),
            wproj_t=nrm(jax.random.fold_in(ks[4], 1), (4 * D, D)),
            bproj=nrm(jax.random.fold_in(ks[5], 1), (1, D), 0.01),
        ))
    return params


def pack_params(params, n_head):
    """Stack per-layer params along a leading layer dim, fuse Q/K/V into one
    (D, 3D) weight with the attention scale folded into the Q part, and cast
    matmul weights to bf16 (biases / LN params stay f32)."""
    D = params[0]['wq_t'].shape[0]
    hd = D // n_head
    scale = float(hd) ** -0.5

    stack = lambda name: jnp.stack([p[name] for p in params], axis=0)

    wqkv = jnp.stack(
        [jnp.concatenate([p['wq_t'] * scale, p['wk_t'], p['wv_t']], axis=1)
         for p in params], axis=0).astype(jnp.bfloat16)           # (layers, D, 3D)
    bqkv = jnp.stack(
        [jnp.concatenate([p['bq'] * scale, p['bk'], p['bv']], axis=1)
         for p in params], axis=0)                                 # (layers, 1, 3D) f32

    return dict(
        ln1_g=stack('ln1_g'), ln1_b=stack('ln1_b'),
        wqkv=wqkv, bqkv=bqkv,
        wo=stack('wo_t').astype(jnp.bfloat16), bo=stack('bo'),
        ln2_g=stack('ln2_g'), ln2_b=stack('ln2_b'),
        wfc=stack('wfc_t').astype(jnp.bfloat16), bfc=stack('bfc'),
        wproj=stack('wproj_t').astype(jnp.bfloat16), bproj=stack('bproj'),
    )


# ---------------------------------------------------------------------------
# Pure-JAX f32 reference (mirrors the PyTorch module) for a sanity check
# ---------------------------------------------------------------------------
def _ref_block(x, p, n_head):
    N, L, D = x.shape
    hd = D // n_head
    h = _layernorm_f32(x, p['ln1_g'], p['ln1_b']).reshape(N * L, D)
    q = (h @ p['wq_t'] + p['bq']).reshape(N, L, n_head, hd).transpose(0, 2, 1, 3)
    k = (h @ p['wk_t'] + p['bk']).reshape(N, L, n_head, hd).transpose(0, 2, 1, 3)
    v = (h @ p['wv_t'] + p['bv']).reshape(N, L, n_head, hd).transpose(0, 2, 1, 3)
    s = jnp.einsum('nhld,nhmd->nhlm', q, k) / jnp.sqrt(jnp.float32(hd))
    a = jax.nn.softmax(s, axis=-1)
    o = jnp.einsum('nhlm,nhmd->nhld', a, v).transpose(0, 2, 1, 3).reshape(N, L, D)
    x = x + (o @ p['wo_t'] + p['bo'])
    h2 = _layernorm_f32(x, p['ln2_g'], p['ln2_b'])
    ff = h2 @ p['wfc_t'] + p['bfc']
    ff = ff * jax.nn.sigmoid(1.702 * ff)
    return x + (ff @ p['wproj_t'] + p['bproj'])


# ---------------------------------------------------------------------------
if __name__ == "__main__":
    # seq, batch, width, heads, layers  (width = 128 -> lane-dense stores;
    # batch = 4 -> 2 batch tiles of Nb=2, T = Nb*L = 16 matmul rows).
    L, N, D, HEADS, LAYERS = 8, 4, 128, 4, 2
    assert D % HEADS == 0

    key = jax.random.PRNGKey(0)
    kx, kp = jax.random.split(key)
    x_lnd = jax.random.normal(kx, (L, N, D), jnp.float32)   # (seq, batch, width)
    params = init_params(kp, D, LAYERS)
    packed = pack_params(params, HEADS)

    fwd = jax.jit(functools.partial(transformer_forward, n_head=HEADS))
    out = jax.block_until_ready(fwd(x_lnd, packed))
    assert out.shape == (L, N, D) and out.dtype == x_lnd.dtype

    # Reference check (f32 reference; kernel uses bf16 matmul inputs with f32
    # accumulation, so allow a bf16-level tolerance).
    xr = jnp.transpose(x_lnd, (1, 0, 2))
    for p in params:
        xr = _ref_block(xr, p, HEADS)
    ref = jnp.transpose(xr, (1, 0, 2))
    err = float(jnp.max(jnp.abs(out - ref)))
    assert jnp.allclose(out, ref, atol=2e-2, rtol=2e-2), f"max abs err {err}"

    print("KERNEL_OK")
</pallas_src>

<mosaic_0001>
module attributes {stable_mosaic.version = 11 : i64} {
  func.func @transformer_kernel(%arg0: i32, %arg1: i32, %arg2: memref<2x8x128xf32, #tpu.memory_space<vmem>>, %arg3: memref<1x1x128xf32, #tpu.memory_space<vmem>>, %arg4: memref<1x1x128xf32, #tpu.memory_space<vmem>>, %arg5: memref<1x128x384xbf16, #tpu.memory_space<vmem>>, %arg6: memref<1x1x384xf32, #tpu.memory_space<vmem>>, %arg7: memref<1x128x128xbf16, #tpu.memory_space<vmem>>, %arg8: memref<1x1x128xf32, #tpu.memory_space<vmem>>, %arg9: memref<1x1x128xf32, #tpu.memory_space<vmem>>, %arg10: memref<1x1x128xf32, #tpu.memory_space<vmem>>, %arg11: memref<1x128x512xbf16, #tpu.memory_space<vmem>>, %arg12: memref<1x1x512xf32, #tpu.memory_space<vmem>>, %arg13: memref<1x512x128xbf16, #tpu.memory_space<vmem>>, %arg14: memref<1x1x128xf32, #tpu.memory_space<vmem>>, %arg15: memref<2x8x128xf32, #tpu.memory_space<vmem>>) attributes {dimension_semantics = [#tpu.dimension_semantics<parallel>, #tpu.dimension_semantics<arbitrary>], iteration_bounds = array<i64: 2, 2>, scalar_prefetch = 0 : i64, scratch_operands = 0 : i64, tpu.core_type = #tpu.core_type<tc>, window_params = [{transform_indices = @transform_0, window_bounds = array<i64: 2, 8, 128>}, {transform_indices = @transform_1, window_bounds = array<i64: 1, 1, 128>}, {transform_indices = @transform_2, window_bounds = array<i64: 1, 1, 128>}, {transform_indices = @transform_3, window_bounds = array<i64: 1, 128, 384>}, {transform_indices = @transform_4, window_bounds = array<i64: 1, 1, 384>}, {transform_indices = @transform_5, window_bounds = array<i64: 1, 128, 128>}, {transform_indices = @transform_6, window_bounds = array<i64: 1, 1, 128>}, {transform_indices = @transform_7, window_bounds = array<i64: 1, 1, 128>}, {transform_indices = @transform_8, window_bounds = array<i64: 1, 1, 128>}, {transform_indices = @transform_9, window_bounds = array<i64: 1, 128, 512>}, {transform_indices = @transform_10, window_bounds = array<i64: 1, 1, 512>}, {transform_indices = @transform_11, window_bounds = array<i64: 1, 512, 128>}, {transform_indices = @transform_12, window_bounds = array<i64: 1, 1, 128>}, {transform_indices = @transform_13, window_bounds = array<i64: 2, 8, 128>}]} {
    %c0_i32 = arith.constant 0 : i32
    %0 = arith.cmpi eq, %arg1, %c0_i32 : i32
    %1 = arith.extui %0 : i1 to i32
    %c0_i32_0 = arith.constant 0 : i32
    %2 = arith.cmpi ne, %1, %c0_i32_0 : i32
    scf.if %2 {
      %c0_74 = arith.constant 0 : index
      %c0_75 = arith.constant 0 : index
      %c0_76 = arith.constant 0 : index
      %197 = vector.load %arg2[%c0_74, %c0_75, %c0_76] : memref<2x8x128xf32, #tpu.memory_space<vmem>>, vector<2x8x128xf32>
      %c0_77 = arith.constant 0 : index
      %c0_78 = arith.constant 0 : index
      %c0_79 = arith.constant 0 : index
      %198 = vector.load %arg15[%c0_77, %c0_78, %c0_79] : memref<2x8x128xf32, #tpu.memory_space<vmem>>, vector<2x8x128xf32>
      tpu.vector_store %arg15[%c0_77, %c0_78, %c0_79], %197 {strides = array<i32>} : memref<2x8x128xf32, #tpu.memory_space<vmem>>, vector<2x8x128xf32>,
    } else {
    }
    %c0 = arith.constant 0 : index
    %c0_1 = arith.constant 0 : index
    %c0_2 = arith.constant 0 : index
    %3 = vector.load %arg15[%c0, %c0_1, %c0_2] : memref<2x8x128xf32, #tpu.memory_space<vmem>>, vector<2x8x128xf32>
    %c0_3 = arith.constant 0 : index
    %c0_4 = arith.constant 0 : index
    %c0_5 = arith.constant 0 : index
    %4 = vector.load %arg3[%c0_3, %c0_4, %c0_5] : memref<1x1x128xf32, #tpu.memory_space<vmem>>, vector<1x1x128xf32>
    %5 = vector.shape_cast %4 : vector<1x1x128xf32> to vector<1x128xf32>
    %c0_6 = arith.constant 0 : index
    %c0_7 = arith.constant 0 : index
    %c0_8 = arith.constant 0 : index
    %6 = vector.load %arg4[%c0_6, %c0_7, %c0_8] : memref<1x1x128xf32, #tpu.memory_space<vmem>>, vector<1x1x128xf32>
    %7 = vector.shape_cast %6 : vector<1x1x128xf32> to vector<1x128xf32>
    %cst = arith.constant dense<0.000000e+00> : vector<2x8xf32>
    %8 = vector.multi_reduction <add>, %3, %cst [2] : vector<2x8x128xf32> to vector<2x8xf32>
    %9 = vector.shape_cast %8 : vector<2x8xf32> to vector<2x8x1xf32>
    %cst_9 = arith.constant 1.280000e+02 : f32
    %10 = vector.broadcast %cst_9 : f32 to vector<2x8x1xf32>
    %11 = arith.divf %9, %10 : vector<2x8x1xf32>
    %12 = vector.broadcast %11 : vector<2x8x1xf32> to vector<2x8x128xf32>
    %13 = arith.subf %3, %12 : vector<2x8x128xf32>
    %14 = arith.mulf %13, %13 : vector<2x8x128xf32>
    %cst_10 = arith.constant dense<0.000000e+00> : vector<2x8xf32>
    %15 = vector.multi_reduction <add>, %14, %cst_10 [2] : vector<2x8x128xf32> to vector<2x8xf32>
    %16 = vector.shape_cast %15 : vector<2x8xf32> to vector<2x8x1xf32>
    %cst_11 = arith.constant 1.280000e+02 : f32
    %17 = vector.broadcast %cst_11 : f32 to vector<2x8x1xf32>
    %18 = arith.divf %16, %17 : vector<2x8x1xf32>
    %19 = vector.broadcast %11 : vector<2x8x1xf32> to vector<2x8x128xf32>
    %20 = arith.subf %3, %19 : vector<2x8x128xf32>
    %cst_12 = arith.constant 9.99999974E-6 : f32
    %21 = vector.broadcast %cst_12 : f32 to vector<2x8x1xf32>
    %22 = arith.addf %18, %21 : vector<2x8x1xf32>
    %23 = math.rsqrt %22 : vector<2x8x1xf32>
    %24 = vector.broadcast %23 : vector<2x8x1xf32> to vector<2x8x128xf32>
    %25 = arith.mulf %20, %24 : vector<2x8x128xf32>
    %26 = vector.shape_cast %5 : vector<1x128xf32> to vector<1x1x128xf32>
    %27 = vector.broadcast %26 : vector<1x1x128xf32> to vector<2x8x128xf32>
    %28 = arith.mulf %25, %27 : vector<2x8x128xf32>
    %29 = vector.shape_cast %7 : vector<1x128xf32> to vector<1x1x128xf32>
    %30 = vector.broadcast %29 : vector<1x1x128xf32> to vector<2x8x128xf32>
    %31 = arith.addf %28, %30 : vector<2x8x128xf32>
    %32 = vector.shape_cast %31 : vector<2x8x128xf32> to vector<16x128xf32>
    %33 = arith.truncf %32 : vector<16x128xf32> to vector<16x128xbf16>
    %c0_13 = arith.constant 0 : index
    %c0_14 = arith.constant 0 : index
    %c0_15 = arith.constant 0 : index
    %34 = vector.load %arg5[%c0_13, %c0_14, %c0_15] : memref<1x128x384xbf16, #tpu.memory_space<vmem>>, vector<1x128x384xbf16>
    %35 = vector.shape_cast %34 : vector<1x128x384xbf16> to vector<128x384xbf16>
    %cst_16 = arith.constant dense<0.000000e+00> : vector<16x384xf32>
    %36 = tpu.matmul %33, %35, %cst_16 {dimension_numbers = #tpu.dot_dimension_numbers<[1], [0], [0], [1], [0, 0, 1, 1], [], []>} : vector<16x128xbf16>, vector<128x384xbf16>, vector<16x384xf32> -> vector<16x384xf32>
    %c0_17 = arith.constant 0 : index
    %c0_18 = arith.constant 0 : index
    %c0_19 = arith.constant 0 : index
    %37 = vector.load %arg6[%c0_17, %c0_18, %c0_19] : memref<1x1x384xf32, #tpu.memory_space<vmem>>, vector<1x1x384xf32>
    %38 = vector.shape_cast %37 : vector<1x1x384xf32> to vector<1x384xf32>
    %39 = vector.broadcast %38 : vector<1x384xf32> to vector<16x384xf32>
    %40 = arith.addf %36, %39 : vector<16x384xf32>
    %41 = vector.extract_strided_slice %40 {offsets = [0, 0], sizes = [16, 32], strides = [1, 1]} : vector<16x384xf32> to vector<16x32xf32>
    %42 = vector.shape_cast %41 : vector<16x32xf32> to vector<2x8x32xf32>
    %43 = arith.truncf %42 : vector<2x8x32xf32> to vector<2x8x32xbf16>
    %44 = vector.extract_strided_slice %40 {offsets = [0, 128], sizes = [16, 32], strides = [1, 1]} : vector<16x384xf32> to vector<16x32xf32>
    %45 = vector.shape_cast %44 : vector<16x32xf32> to vector<2x8x32xf32>
    %46 = arith.truncf %45 : vector<2x8x32xf32> to vector<2x8x32xbf16>
    %47 = vector.extract_strided_slice %40 {offsets = [0, 256], sizes = [16, 32], strides = [1, 1]} : vector<16x384xf32> to vector<16x32xf32>
    %48 = vector.shape_cast %47 : vector<16x32xf32> to vector<2x8x32xf32>
    %49 = arith.truncf %48 : vector<2x8x32xf32> to vector<2x8x32xbf16>
    "tpu.trace_start"() <{level = 10 : i32, message = "nld,nmd->nlm"}> : () -> ()
    %cst_20 = arith.constant dense<0.000000e+00> : vector<2x8x8xf32>
    %50 = tpu.matmul %43, %46, %cst_20 {dimension_numbers = #tpu.dot_dimension_numbers<[2], [2], [1], [1], [0, 0, 0, 1, 1, 1], [0], [0]>} : vector<2x8x32xbf16>, vector<2x8x32xbf16>, vector<2x8x8xf32> -> vector<2x8x8xf32>
    "tpu.trace_stop"() : () -> ()
    %cst_21 = arith.constant dense<0xFF800000> : vector<2x8xf32>
    %51 = vector.multi_reduction <maximumf>, %50, %cst_21 [2] : vector<2x8x8xf32> to vector<2x8xf32>
    %52 = vector.shape_cast %51 : vector<2x8xf32> to vector<2x8x1xf32>
    %53 = vector.broadcast %52 : vector<2x8x1xf32> to vector<2x8x8xf32>
    %54 = arith.subf %50, %53 : vector<2x8x8xf32>
    %55 = math.exp %54 : vector<2x8x8xf32>
    %cst_22 = arith.constant dense<0.000000e+00> : vector<2x8xf32>
    %56 = vector.multi_reduction <add>, %55, %cst_22 [2] : vector<2x8x8xf32> to vector<2x8xf32>
    %57 = vector.shape_cast %56 : vector<2x8xf32> to vector<2x8x1xf32>
    %58 = tpu.reciprocal %57 {approx = true} : vector<2x8x1xf32> -> vector<2x8x1xf32>
    %59 = vector.broadcast %58 : vector<2x8x1xf32> to vector<2x8x8xf32>
    %60 = arith.mulf %55, %59 : vector<2x8x8xf32>
    %61 = arith.truncf %60 : vector<2x8x8xf32> to vector<2x8x8xbf16>
    "tpu.trace_start"() <{level = 10 : i32, message = "nlm,nmd->nld"}> : () -> ()
    %cst_23 = arith.constant dense<0.000000e+00> : vector<2x8x32xf32>
    %62 = tpu.matmul %61, %49, %cst_23 {dimension_numbers = #tpu.dot_dimension_numbers<[2], [1], [1], [2], [0, 0, 0, 1, 1, 2], [0], [0]>} : vector<2x8x8xbf16>, vector<2x8x32xbf16>, vector<2x8x32xf32> -> vector<2x8x32xf32>
    "tpu.trace_stop"() : () -> ()
    %63 = vector.extract_strided_slice %40 {offsets = [0, 32], sizes = [16, 32], strides = [1, 1]} : vector<16x384xf32> to vector<16x32xf32>
    %64 = vector.shape_cast %63 : vector<16x32xf32> to vector<2x8x32xf32>
    %65 = arith.truncf %64 : vector<2x8x32xf32> to vector<2x8x32xbf16>
    %66 = vector.extract_strided_slice %40 {offsets = [0, 160], sizes = [16, 32], strides = [1, 1]} : vector<16x384xf32> to vector<16x32xf32>
    %67 = vector.shape_cast %66 : vector<16x32xf32> to vector<2x8x32xf32>
    %68 = arith.truncf %67 : vector<2x8x32xf32> to vector<2x8x32xbf16>
    %69 = vector.extract_strided_slice %40 {offsets = [0, 288], sizes = [16, 32], strides = [1, 1]} : vector<16x384xf32> to vector<16x32xf32>
    %70 = vector.shape_cast %69 : vector<16x32xf32> to vector<2x8x32xf32>
    %71 = arith.truncf %70 : vector<2x8x32xf32> to vector<2x8x32xbf16>
    "tpu.trace_start"() <{level = 10 : i32, message = "nld,nmd->nlm"}> : () -> ()
    %cst_24 = arith.constant dense<0.000000e+00> : vector<2x8x8xf32>
    %72 = tpu.matmul %65, %68, %cst_24 {dimension_numbers = #tpu.dot_dimension_numbers<[2], [2], [1], [1], [0, 0, 0, 1, 1, 1], [0], [0]>} : vector<2x8x32xbf16>, vector<2x8x32xbf16>, vector<2x8x8xf32> -> vector<2x8x8xf32>
    "tpu.trace_stop"() : () -> ()
    %cst_25 = arith.constant dense<0xFF800000> : vector<2x8xf32>
    %73 = vector.multi_reduction <maximumf>, %72, %cst_25 [2] : vector<2x8x8xf32> to vector<2x8xf32>
    %74 = vector.shape_cast %73 : vector<2x8xf32> to vector<2x8x1xf32>
    %75 = vector.broadcast %74 : vector<2x8x1xf32> to vector<2x8x8xf32>
    %76 = arith.subf %72, %75 : vector<2x8x8xf32>
    %77 = math.exp %76 : vector<2x8x8xf32>
    %cst_26 = arith.constant dense<0.000000e+00> : vector<2x8xf32>
    %78 = vector.multi_reduction <add>, %77, %cst_26 [2] : vector<2x8x8xf32> to vector<2x8xf32>
    %79 = vector.shape_cast %78 : vector<2x8xf32> to vector<2x8x1xf32>
    %80 = tpu.reciprocal %79 {approx = true} : vector<2x8x1xf32> -> vector<2x8x1xf32>
    %81 = vector.broadcast %80 : vector<2x8x1xf32> to vector<2x8x8xf32>
    %82 = arith.mulf %77, %81 : vector<2x8x8xf32>
    %83 = arith.truncf %82 : vector<2x8x8xf32> to vector<2x8x8xbf16>
    "tpu.trace_start"() <{level = 10 : i32, message = "nlm,nmd->nld"}> : () -> ()
    %cst_27 = arith.constant dense<0.000000e+00> : vector<2x8x32xf32>
    %84 = tpu.matmul %83, %71, %cst_27 {dimension_numbers = #tpu.dot_dimension_numbers<[2], [1], [1], [2], [0, 0, 0, 1, 1, 2], [0], [0]>} : vector<2x8x8xbf16>, vector<2x8x32xbf16>, vector<2x8x32xf32> -> vector<2x8x32xf32>
    "tpu.trace_stop"() : () -> ()
    %85 = vector.extract_strided_slice %40 {offsets = [0, 64], sizes = [16, 32], strides = [1, 1]} : vector<16x384xf32> to vector<16x32xf32>
    %86 = vector.shape_cast %85 : vector<16x32xf32> to vector<2x8x32xf32>
    %87 = arith.truncf %86 : vector<2x8x32xf32> to vector<2x8x32xbf16>
    %88 = vector.extract_strided_slice %40 {offsets = [0, 192], sizes = [16, 32], strides = [1, 1]} : vector<16x384xf32> to vector<16x32xf32>
    %89 = vector.shape_cast %88 : vector<16x32xf32> to vector<2x8x32xf32>
    %90 = arith.truncf %89 : vector<2x8x32xf32> to vector<2x8x32xbf16>
    %91 = vector.extract_strided_slice %40 {offsets = [0, 320], sizes = [16, 32], strides = [1, 1]} : vector<16x384xf32> to vector<16x32xf32>
    %92 = vector.shape_cast %91 : vector<16x32xf32> to vector<2x8x32xf32>
    %93 = arith.truncf %92 : vector<2x8x32xf32> to vector<2x8x32xbf16>
    "tpu.trace_start"() <{level = 10 : i32, message = "nld,nmd->nlm"}> : () -> ()
    %cst_28 = arith.constant dense<0.000000e+00> : vector<2x8x8xf32>
    %94 = tpu.matmul %87, %90, %cst_28 {dimension_numbers = #tpu.dot_dimension_numbers<[2], [2], [1], [1], [0, 0, 0, 1, 1, 1], [0], [0]>} : vector<2x8x32xbf16>, vector<2x8x32xbf16>, vector<2x8x8xf32> -> vector<2x8x8xf32>
    "tpu.trace_stop"() : () -> ()
    %cst_29 = arith.constant dense<0xFF800000> : vector<2x8xf32>
    %95 = vector.multi_reduction <maximumf>, %94, %cst_29 [2] : vector<2x8x8xf32> to vector<2x8xf32>
    %96 = vector.shape_cast %95 : vector<2x8xf32> to vector<2x8x1xf32>
    %97 = vector.broadcast %96 : vector<2x8x1xf32> to vector<2x8x8xf32>
    %98 = arith.subf %94, %97 : vector<2x8x8xf32>
    %99 = math.exp %98 : vector<2x8x8xf32>
    %cst_30 = arith.constant dense<0.000000e+00> : vector<2x8xf32>
    %100 = vector.multi_reduction <add>, %99, %cst_30 [2] : vector<2x8x8xf32> to vector<2x8xf32>
    %101 = vector.shape_cast %100 : vector<2x8xf32> to vector<2x8x1xf32>
    %102 = tpu.reciprocal %101 {approx = true} : vector<2x8x1xf32> -> vector<2x8x1xf32>
    %103 = vector.broadcast %102 : vector<2x8x1xf32> to vector<2x8x8xf32>
    %104 = arith.mulf %99, %103 : vector<2x8x8xf32>
    %105 = arith.truncf %104 : vector<2x8x8xf32> to vector<2x8x8xbf16>
    "tpu.trace_start"() <{level = 10 : i32, message = "nlm,nmd->nld"}> : () -> ()
    %cst_31 = arith.constant dense<0.000000e+00> : vector<2x8x32xf32>
    %106 = tpu.matmul %105, %93, %cst_31 {dimension_numbers = #tpu.dot_dimension_numbers<[2], [1], [1], [2], [0, 0, 0, 1, 1, 2], [0], [0]>} : vector<2x8x8xbf16>, vector<2x8x32xbf16>, vector<2x8x32xf32> -> vector<2x8x32xf32>
    "tpu.trace_stop"() : () -> ()
    %107 = vector.extract_strided_slice %40 {offsets = [0, 96], sizes = [16, 32], strides = [1, 1]} : vector<16x384xf32> to vector<16x32xf32>
    %108 = vector.shape_cast %107 : vector<16x32xf32> to vector<2x8x32xf32>
    %109 = arith.truncf %108 : vector<2x8x32xf32> to vector<2x8x32xbf16>
    %110 = vector.extract_strided_slice %40 {offsets = [0, 224], sizes = [16, 32], strides = [1, 1]} : vector<16x384xf32> to vector<16x32xf32>
    %111 = vector.shape_cast %110 : vector<16x32xf32> to vector<2x8x32xf32>
    %112 = arith.truncf %111 : vector<2x8x32xf32> to vector<2x8x32xbf16>
    %113 = vector.extract_strided_slice %40 {offsets = [0, 352], sizes = [16, 32], strides = [1, 1]} : vector<16x384xf32> to vector<16x32xf32>
    %114 = vector.shape_cast %113 : vector<16x32xf32> to vector<2x8x32xf32>
    %115 = arith.truncf %114 : vector<2x8x32xf32> to vector<2x8x32xbf16>
    "tpu.trace_start"() <{level = 10 : i32, message = "nld,nmd->nlm"}> : () -> ()
    %cst_32 = arith.constant dense<0.000000e+00> : vector<2x8x8xf32>
    %116 = tpu.matmul %109, %112, %cst_32 {dimension_numbers = #tpu.dot_dimension_numbers<[2], [2], [1], [1], [0, 0, 0, 1, 1, 1], [0], [0]>} : vector<2x8x32xbf16>, vector<2x8x32xbf16>, vector<2x8x8xf32> -> vector<2x8x8xf32>
    "tpu.trace_stop"() : () -> ()
    %cst_33 = arith.constant dense<0xFF800000> : vector<2x8xf32>
    %117 = vector.multi_reduction <maximumf>, %116, %cst_33 [2] : vector<2x8x8xf32> to vector<2x8xf32>
    %118 = vector.shape_cast %117 : vector<2x8xf32> to vector<2x8x1xf32>
    %119 = vector.broadcast %118 : vector<2x8x1xf32> to vector<2x8x8xf32>
    %120 = arith.subf %116, %119 : vector<2x8x8xf32>
    %121 = math.exp %120 : vector<2x8x8xf32>
    %cst_34 = arith.constant dense<0.000000e+00> : vector<2x8xf32>
    %122 = vector.multi_reduction <add>, %121, %cst_34 [2] : vector<2x8x8xf32> to vector<2x8xf32>
    %123 = vector.shape_cast %122 : vector<2x8xf32> to vector<2x8x1xf32>
    %124 = tpu.reciprocal %123 {approx = true} : vector<2x8x1xf32> -> vector<2x8x1xf32>
    %125 = vector.broadcast %124 : vector<2x8x1xf32> to vector<2x8x8xf32>
    %126 = arith.mulf %121, %125 : vector<2x8x8xf32>
    %127 = arith.truncf %126 : vector<2x8x8xf32> to vector<2x8x8xbf16>
    "tpu.trace_start"() <{level = 10 : i32, message = "nlm,nmd->nld"}> : () -> ()
    %cst_35 = arith.constant dense<0.000000e+00> : vector<2x8x32xf32>
    %128 = tpu.matmul %127, %115, %cst_35 {dimension_numbers = #tpu.dot_dimension_numbers<[2], [1], [1], [2], [0, 0, 0, 1, 1, 2], [0], [0]>} : vector<2x8x8xbf16>, vector<2x8x32xbf16>, vector<2x8x32xf32> -> vector<2x8x32xf32>
    "tpu.trace_stop"() : () -> ()
    %129 = tpu.concatenate %62, %84, %106, %128 in 2 : vector<2x8x32xf32>, vector<2x8x32xf32>, vector<2x8x32xf32>, vector<2x8x32xf32> -> vector<2x8x128xf32>
    %130 = vector.shape_cast %129 : vector<2x8x128xf32> to vector<16x128xf32>
    %131 = arith.truncf %130 : vector<16x128xf32> to vector<16x128xbf16>
    %c0_36 = arith.constant 0 : index
    %c0_37 = arith.constant 0 : index
    %c0_38 = arith.constant 0 : index
    %132 = vector.load %arg7[%c0_36, %c0_37, %c0_38] : memref<1x128x128xbf16, #tpu.memory_space<vmem>>, vector<1x128x128xbf16>
    %133 = vector.shape_cast %132 : vector<1x128x128xbf16> to vector<128x128xbf16>
    %cst_39 = arith.constant dense<0.000000e+00> : vector<16x128xf32>
    %134 = tpu.matmul %131, %133, %cst_39 {dimension_numbers = #tpu.dot_dimension_numbers<[1], [0], [0], [1], [0, 0, 1, 1], [], []>} : vector<16x128xbf16>, vector<128x128xbf16>, vector<16x128xf32> -> vector<16x128xf32>
    %c0_40 = arith.constant 0 : index
    %c0_41 = arith.constant 0 : index
    %c0_42 = arith.constant 0 : index
    %135 = vector.load %arg8[%c0_40, %c0_41, %c0_42] : memref<1x1x128xf32, #tpu.memory_space<vmem>>, vector<1x1x128xf32>
    %136 = vector.shape_cast %135 : vector<1x1x128xf32> to vector<1x128xf32>
    %137 = vector.broadcast %136 : vector<1x128xf32> to vector<16x128xf32>
    %138 = arith.addf %134, %137 : vector<16x128xf32>
    %139 = vector.shape_cast %138 : vector<16x128xf32> to vector<2x8x128xf32>
    %140 = arith.addf %3, %139 : vector<2x8x128xf32>
    %c0_43 = arith.constant 0 : index
    %c0_44 = arith.constant 0 : index
    %c0_45 = arith.constant 0 : index
    %141 = vector.load %arg9[%c0_43, %c0_44, %c0_45] : memref<1x1x128xf32, #tpu.memory_space<vmem>>, vector<1x1x128xf32>
    %142 = vector.shape_cast %141 : vector<1x1x128xf32> to vector<1x128xf32>
    %c0_46 = arith.constant 0 : index
    %c0_47 = arith.constant 0 : index
    %c0_48 = arith.constant 0 : index
    %143 = vector.load %arg10[%c0_46, %c0_47, %c0_48] : memref<1x1x128xf32, #tpu.memory_space<vmem>>, vector<1x1x128xf32>
    %144 = vector.shape_cast %143 : vector<1x1x128xf32> to vector<1x128xf32>
    %cst_49 = arith.constant dense<0.000000e+00> : vector<2x8xf32>
    %145 = vector.multi_reduction <add>, %140, %cst_49 [2] : vector<2x8x128xf32> to vector<2x8xf32>
    %146 = vector.shape_cast %145 : vector<2x8xf32> to vector<2x8x1xf32>
    %cst_50 = arith.constant 1.280000e+02 : f32
    %147 = vector.broadcast %cst_50 : f32 to vector<2x8x1xf32>
    %148 = arith.divf %146, %147 : vector<2x8x1xf32>
    %149 = vector.broadcast %148 : vector<2x8x1xf32> to vector<2x8x128xf32>
    %150 = arith.subf %140, %149 : vector<2x8x128xf32>
    %151 = arith.mulf %150, %150 : vector<2x8x128xf32>
    %cst_51 = arith.constant dense<0.000000e+00> : vector<2x8xf32>
    %152 = vector.multi_reduction <add>, %151, %cst_51 [2] : vector<2x8x128xf32> to vector<2x8xf32>
    %153 = vector.shape_cast %152 : vector<2x8xf32> to vector<2x8x1xf32>
    %cst_52 = arith.constant 1.280000e+02 : f32
    %154 = vector.broadcast %cst_52 : f32 to vector<2x8x1xf32>
    %155 = arith.divf %153, %154 : vector<2x8x1xf32>
    %156 = vector.broadcast %148 : vector<2x8x1xf32> to vector<2x8x128xf32>
    %157 = arith.subf %140, %156 : vector<2x8x128xf32>
    %cst_53 = arith.constant 9.99999974E-6 : f32
    %158 = vector.broadcast %cst_53 : f32 to vector<2x8x1xf32>
    %159 = arith.addf %155, %158 : vector<2x8x1xf32>
    %160 = math.rsqrt %159 : vector<2x8x1xf32>
    %161 = vector.broadcast %160 : vector<2x8x1xf32> to vector<2x8x128xf32>
    %162 = arith.mulf %157, %161 : vector<2x8x128xf32>
    %163 = vector.shape_cast %142 : vector<1x128xf32> to vector<1x1x128xf32>
    %164 = vector.broadcast %163 : vector<1x1x128xf32> to vector<2x8x128xf32>
    %165 = arith.mulf %162, %164 : vector<2x8x128xf32>
    %166 = vector.shape_cast %144 : vector<1x128xf32> to vector<1x1x128xf32>
    %167 = vector.broadcast %166 : vector<1x1x128xf32> to vector<2x8x128xf32>
    %168 = arith.addf %165, %167 : vector<2x8x128xf32>
    %169 = vector.shape_cast %168 : vector<2x8x128xf32> to vector<16x128xf32>
    %170 = arith.truncf %169 : vector<16x128xf32> to vector<16x128xbf16>
    %c0_54 = arith.constant 0 : index
    %c0_55 = arith.constant 0 : index
    %c0_56 = arith.constant 0 : index
    %171 = vector.load %arg11[%c0_54, %c0_55, %c0_56] : memref<1x128x512xbf16, #tpu.memory_space<vmem>>, vector<1x128x512xbf16>
    %172 = vector.shape_cast %171 : vector<1x128x512xbf16> to vector<128x512xbf16>
    %cst_57 = arith.constant dense<0.000000e+00> : vector<16x512xf32>
    %173 = tpu.matmul %170, %172, %cst_57 {dimension_numbers = #tpu.dot_dimension_numbers<[1], [0], [0], [1], [0, 0, 1, 1], [], []>} : vector<16x128xbf16>, vector<128x512xbf16>, vector<16x512xf32> -> vector<16x512xf32>
    %c0_58 = arith.constant 0 : index
    %c0_59 = arith.constant 0 : index
    %c0_60 = arith.constant 0 : index
    %174 = vector.load %arg12[%c0_58, %c0_59, %c0_60] : memref<1x1x512xf32, #tpu.memory_space<vmem>>, vector<1x1x512xf32>
    %175 = vector.shape_cast %174 : vector<1x1x512xf32> to vector<1x512xf32>
    %176 = vector.broadcast %175 : vector<1x512xf32> to vector<16x512xf32>
    %177 = arith.addf %173, %176 : vector<16x512xf32>
    %cst_61 = arith.constant 8.510000e-01 : f32
    %178 = vector.broadcast %cst_61 : f32 to vector<16x512xf32>
    %179 = arith.mulf %178, %177 : vector<16x512xf32>
    %180 = math.tanh %179 : vector<16x512xf32>
    %cst_62 = arith.constant 1.000000e+00 : f32
    %181 = vector.broadcast %cst_62 : f32 to vector<16x512xf32>
    %182 = arith.addf %180, %181 : vector<16x512xf32>
    %cst_63 = arith.constant 5.000000e-01 : f32
    %183 = vector.broadcast %cst_63 : f32 to vector<16x512xf32>
    %184 = arith.mulf %183, %182 : vector<16x512xf32>
    %185 = arith.mulf %177, %184 : vector<16x512xf32>
    %186 = arith.truncf %185 : vector<16x512xf32> to vector<16x512xbf16>
    %c0_64 = arith.constant 0 : index
    %c0_65 = arith.constant 0 : index
    %c0_66 = arith.constant 0 : index
    %187 = vector.load %arg13[%c0_64, %c0_65, %c0_66] : memref<1x512x128xbf16, #tpu.memory_space<vmem>>, vector<1x512x128xbf16>
    %188 = vector.shape_cast %187 : vector<1x512x128xbf16> to vector<512x128xbf16>
    %cst_67 = arith.constant dense<0.000000e+00> : vector<16x128xf32>
    %189 = tpu.matmul %186, %188, %cst_67 {dimension_numbers = #tpu.dot_dimension_numbers<[1], [0], [0], [1], [0, 0, 1, 1], [], []>} : vector<16x512xbf16>, vector<512x128xbf16>, vector<16x128xf32> -> vector<16x128xf32>
    %c0_68 = arith.constant 0 : index
    %c0_69 = arith.constant 0 : index
    %c0_70 = arith.constant 0 : index
    %190 = vector.load %arg14[%c0_68, %c0_69, %c0_70] : memref<1x1x128xf32, #tpu.memory_space<vmem>>, vector<1x1x128xf32>
    %191 = vector.shape_cast %190 : vector<1x1x128xf32> to vector<1x128xf32>
    %192 = vector.broadcast %191 : vector<1x128xf32> to vector<16x128xf32>
    %193 = arith.addf %189, %192 : vector<16x128xf32>
    %194 = vector.shape_cast %193 : vector<16x128xf32> to vector<2x8x128xf32>
    %195 = arith.addf %140, %194 : vector<2x8x128xf32>
    %c0_71 = arith.constant 0 : index
    %c0_72 = arith.constant 0 : index
    %c0_73 = arith.constant 0 : index
    %196 = vector.load %arg15[%c0_71, %c0_72, %c0_73] : memref<2x8x128xf32, #tpu.memory_space<vmem>>, vector<2x8x128xf32>
    tpu.vector_store %arg15[%c0_71, %c0_72, %c0_73], %195 {strides = array<i32>} : memref<2x8x128xf32, #tpu.memory_space<vmem>>, vector<2x8x128xf32>,
    return
  }
  func.func @transform_0(%arg0: i32, %arg1: i32) -> (i32, i32, i32) {
    %c0_i32 = arith.constant 0 : i32
    %c0_i32_0 = arith.constant 0 : i32
    %c0_i32_1 = arith.constant 0 : i32
    return %arg0, %c0_i32, %c0_i32_0 : i32, i32, i32
  }
  func.func @transform_1(%arg0: i32, %arg1: i32) -> (i32, i32, i32) {
    %c0_i32 = arith.constant 0 : i32
    %c0_i32_0 = arith.constant 0 : i32
    %c0_i32_1 = arith.constant 0 : i32
    return %arg1, %c0_i32, %c0_i32_0 : i32, i32, i32
  }
  func.func @transform_2(%arg0: i32, %arg1: i32) -> (i32, i32, i32) {
    %c0_i32 = arith.constant 0 : i32
    %c0_i32_0 = arith.constant 0 : i32
    %c0_i32_1 = arith.constant 0 : i32
    return %arg1, %c0_i32, %c0_i32_0 : i32, i32, i32
  }
  func.func @transform_3(%arg0: i32, %arg1: i32) -> (i32, i32, i32) {
    %c0_i32 = arith.constant 0 : i32
    %c0_i32_0 = arith.constant 0 : i32
    %c0_i32_1 = arith.constant 0 : i32
    return %arg1, %c0_i32, %c0_i32_0 : i32, i32, i32
  }
  func.func @transform_4(%arg0: i32, %arg1: i32) -> (i32, i32, i32) {
    %c0_i32 = arith.constant 0 : i32
    %c0_i32_0 = arith.constant 0 : i32
    %c0_i32_1 = arith.constant 0 : i32
    return %arg1, %c0_i32, %c0_i32_0 : i32, i32, i32
  }
  func.func @transform_5(%arg0: i32, %arg1: i32) -> (i32, i32, i32) {
    %c0_i32 = arith.constant 0 : i32
    %c0_i32_0 = arith.constant 0 : i32
    %c0_i32_1 = arith.constant 0 : i32
    return %arg1, %c0_i32, %c0_i32_0 : i32, i32, i32
  }
  func.func @transform_6(%arg0: i32, %arg1: i32) -> (i32, i32, i32) {
    %c0_i32 = arith.constant 0 : i32
    %c0_i32_0 = arith.constant 0 : i32
    %c0_i32_1 = arith.constant 0 : i32
    return %arg1, %c0_i32, %c0_i32_0 : i32, i32, i32
  }
  func.func @transform_7(%arg0: i32, %arg1: i32) -> (i32, i32, i32) {
    %c0_i32 = arith.constant 0 : i32
    %c0_i32_0 = arith.constant 0 : i32
    %c0_i32_1 = arith.constant 0 : i32
    return %arg1, %c0_i32, %c0_i32_0 : i32, i32, i32
  }
  func.func @transform_8(%arg0: i32, %arg1: i32) -> (i32, i32, i32) {
    %c0_i32 = arith.constant 0 : i32
    %c0_i32_0 = arith.constant 0 : i32
    %c0_i32_1 = arith.constant 0 : i32
    return %arg1, %c0_i32, %c0_i32_0 : i32, i32, i32
  }
  func.func @transform_9(%arg0: i32, %arg1: i32) -> (i32, i32, i32) {
    %c0_i32 = arith.constant 0 : i32
    %c0_i32_0 = arith.constant 0 : i32
    %c0_i32_1 = arith.constant 0 : i32
    return %arg1, %c0_i32, %c0_i32_0 : i32, i32, i32
  }
  func.func @transform_10(%arg0: i32, %arg1: i32) -> (i32, i32, i32) {
    %c0_i32 = arith.constant 0 : i32
    %c0_i32_0 = arith.constant 0 : i32
    %c0_i32_1 = arith.constant 0 : i32
    return %arg1, %c0_i32, %c0_i32_0 : i32, i32, i32
  }
  func.func @transform_11(%arg0: i32, %arg1: i32) -> (i32, i32, i32) {
    %c0_i32 = arith.constant 0 : i32
    %c0_i32_0 = arith.constant 0 : i32
    %c0_i32_1 = arith.constant 0 : i32
    return %arg1, %c0_i32, %c0_i32_0 : i32, i32, i32
  }
  func.func @transform_12(%arg0: i32, %arg1: i32) -> (i32, i32, i32) {
    %c0_i32 = arith.constant 0 : i32
    %c0_i32_0 = arith.constant 0 : i32
    %c0_i32_1 = arith.constant 0 : i32
    return %arg1, %c0_i32, %c0_i32_0 : i32, i32, i32
  }
  func.func @transform_13(%arg0: i32, %arg1: i32) -> (i32, i32, i32) {
    %c0_i32 = arith.constant 0 : i32
    %c0_i32_0 = arith.constant 0 : i32
    %c0_i32_1 = arith.constant 0 : i32
    return %arg0, %c0_i32, %c0_i32_0 : i32, i32, i32
  }
}

</mosaic_0001>

<bundles_post_ra>
// kernel: transformer_forward.1
= control target key start
LH: loop header
LB: loop body
LE: loop exit
PB: predicated region body
PF: predicated region fallthrough
CT: control target
= control target key end

     0   :  { %s4605_s0 = inlined_call_operand.vmem [shape: f32[4,8,128], index: 0, kind: input, shape index: {}, may-alias: {0,13}]   ;;  %s4606_s1 = inlined_call_operand.vmem [shape: f32[2,1,128], index: 1, kind: input, shape index: {}]   ;;  %s4607_s2 = inlined_call_operand.vmem [shape: f32[2,1,128], index: 2, kind: input, shape index: {}]   ;;  %s4608_s3 = inlined_call_operand.hbm [shape: bf16[2,128,384], index: 3, kind: input, shape index: {}]   ;;  %s4609_s4 = inlined_call_operand.vmem [shape: f32[2,1,384], index: 4, kind: input, shape index: {}]   ;;  %s4610_s5 = inlined_call_operand.hbm [shape: bf16[2,128,128], index: 5, kind: input, shape index: {}]   ;;  %s4611_s6 = inlined_call_operand.vmem [shape: f32[2,1,128], index: 6, kind: input, shape index: {}]   ;;  %s4612_s7 = inlined_call_operand.vmem [shape: f32[2,1,128], index: 7, kind: input, shape index: {}]   ;;  %s4613_s8 = inlined_call_operand.vmem [shape: f32[2,1,128], index: 8, kind: input, shape index: {}]   ;;  %s4614_s9 = inlined_call_operand.hbm [shape: bf16[2,128,512], index: 9, kind: input, shape index: {}]   ;;  %s4615_s10 = inlined_call_operand.vmem [shape: f32[2,1,512], index: 10, kind: input, shape index: {}]   ;;  %s4616_s11 = inlined_call_operand.hbm [shape: bf16[2,512,128], index: 11, kind: input, shape index: {}]   ;;  %s4617_s12 = inlined_call_operand.vmem [shape: f32[2,1,128], index: 12, kind: input, shape index: {}]   ;;  %s4618_s13 = inlined_call_operand.vmem [shape: f32[4,8,128], index: 13, kind: output, shape index: {}, may-alias: {0,13}]  }
   0x1   :  { %4629 = sst [smem:[#allocation21_spill]] %s4605_s0 }
   0x2   :  { %4630 = sst [smem:[#allocation22_spill]] %s4608_s3 }
   0x3   :  { %4631 = sst [smem:[#allocation23_spill]] %s4609_s4 }
   0x4   :  { %4632 = sst [smem:[#allocation24_spill]] %s4610_s5 }
   0x5   :  { %4633 = sst [smem:[#allocation25_spill]] %s4611_s6 }
   0x6   :  { %4634 = sst [smem:[#allocation26_spill]] %s4612_s7 }
   0x7   :  { %4635 = sst [smem:[#allocation27_spill]] %s4613_s8 }
   0x8   :  { %4636 = sst [smem:[#allocation28_spill]] %s4614_s9 }
   0x9   :  { %4637 = sst [smem:[#allocation29_spill]] %s4615_s10 }
   0xa   :  { %4638 = sst [smem:[#allocation30_spill]] %s4616_s11 }
   0xb   :  { %4639 = sst [smem:[#allocation31_spill]] %s4617_s12 }
   0xc   :  { %4640 = sst [smem:[#allocation32_spill]] %s4618_s13 }
   0xd   :  { %18 = vsyncpa [#allocation3], 0 }
   0xe   :  { %20 = vsyncpa [#allocation3 + $0x1], 0 }
   0xf   :  { %21 = vsyncpa [#allocation5], 0 }
  0x10   :  { %23 = vsyncpa [#allocation5 + $0x1], 0 }
  0x11   :  { %24 = vsyncpa [#allocation8], 0 }
  0x12   :  { %26 = vsyncpa [#allocation8 + $0x1], 0  ;;  %s3990_s25 = smov 0   ;;  %s3992_s26 = smov 0  }
  0x13   :  { %s3994_s27 = smov 0   ;;  %s3996_s28 = smov 0  }
  0x14   :  { %s3998_s29 = smov 0   ;;  %s4000_s30 = smov 0  }
  0x15   :  { %s4002_s14 = smov 0   ;;  %s4004_s15 = smov 0  }
  0x16 LB: > { %4641 = sst [smem:[#allocation12_spill]] %s3878_s26  ;;  %s4620_s16 = sadd.s32 4294967295, %s3902_s15   ;;  %s3902_s15 = sphi %s4004_s15, %s32_s15   ;;  %s3898_s14 = sphi %s4002_s14, %s4683_s14   ;;  %s3894_s30 = sphi %s4000_s30, %s4682_s30   ;;  %s3890_s29 = sphi %s3998_s29, %s4681_s29   ;;  %s3886_s28 = sphi %s3996_s28, %s4680_s28   ;;  %s3882_s27 = sphi %s3994_s27, %s4679_s27   ;;  %s3878_s26 = sphi %s3992_s26, %s4678_s26   ;;  %s3874_s25 = sphi %s3990_s25, %s4677_s25  }
  0x17   : > { %4642 = sst [smem:[#allocation13_spill]] %s3882_s27  ;;  %s41_s17 = sadd.s32 1, %s3894_s30 }
  0x18   : > { %4643 = sst [smem:[#allocation14_spill]] %s3894_s30  ;;  %p42_p0 = scmp.ge.s32.totalorder %s41_s17, 2 }
  0x19   : > { %4644 = sst [smem:[#allocation15_spill]] %s3898_s14  ;;  %s44_s18 = sadd.s32 1, %s3898_s14 }
  0x1a   : > { %4645 = sst [smem:[#allocation16_spill]] %s3902_s15  ;;  %s129_s19 = sadd.s32 1, %s3882_s27 }
  0x1b   : > { %p136_p1 = scmp.ne.s32.totalorder %s3882_s27, %s3878_s26  ;;  %s4685_s17 = smov (%p42_p0, %s41_s17), 0 }
  0x1c   : > { %4646 = sst [smem:[#allocation17_spill]] %s4685_s17  ;;  %s4687_s18 = smov (!%p42_p0, %s44_s18), %s3898_s14 }
  0x1d   : > { %s126_s20 = ssub.s32 %s3894_s30, %s4685_s17  ;;  %p137_p2 = scmp.eq.s32.totalorder %s3902_s15, 0 }
  0x1e   : > { %p46_p3 = scmp.ge.s32.totalorder %s4687_s18, 2  ;;  %p127_p4 = scmp.eq.s32.totalorder %s126_s20, 0 }
  0x1f   : > { %p138_p5 = por %p137_p2, %p136_p1  ;;  %p142_p6 = scmp.ne.s32.totalorder %s3878_s26, %s3874_s25 }
  0x20   : > { %s4689_s18 = smov (%p46_p3, %s4687_s18), 0  ;;  %p143_p7 = scmp.eq.s32.totalorder %s4620_s16, 0 }
  0x21   : > { %4647 = sst [smem:[#allocation18_spill]] %s4689_s18  ;;  %p3446_p8 = scmp.lt.s32.totalorder %s3902_s15, 4 }
  0x22   : > { %s4044_s21 = scalar_select %p127_p4, %s3882_s27, %s129_s19  }
  0x23   : > { %s4050_s22 = sand.u32 1, %s3882_s27   ;;  %p4052_p9 = por %p143_p7, %p142_p6 }
  0x24   : > { %4648 = sst [smem:[#allocation19_spill]] %s4044_s21  ;;  %s475_s24 = sand.u32 1, %s3902_s15  }
  0x25   : > { %p4057_p10 = pnand %p3446_p8, %p138_p5  ;;  %s3049_s25 = sshll.u32 %s4050_s22, 6 }
  0x26   : > { %s3188_s19 = sshll.u32 %s3894_s30, 10  ;;  %s4651_s5 = sld [smem:[#allocation24_spill]] }
  0x27   : > { %s479_s14 = scalar_lea.vmem [#allocation4], %s3049_s25  ;;  %p3058_p11 = scmp.ge.s32.totalorder %s3902_s15, 1 }
  0x28   : > { %s486_s21 = sshll.u32 %s479_s14, 4  ;;  %s4067_s27 = scalar_lea.sflag [#allocation5], %s475_s24  ;;  %s487_s21 = int_to_ptr.vmem [resolvable:$true] %s486_s21 }
  0x29   : > { %p3718_p12 = pneg %p4057_p10  ;;  %s3729_s13 = scalar_lea.vmem %s487_s21, 1024 }
  0x2a   : > { %p3730_p13 = scmp.ne.s32.totalorder %s487_s21, %s3729_s13  ;;  %s3904_s12 = smov [#allocation4]  }
  0x2b   : > { %s3734_s10 = sshll.u32 %s3904_s12, 4  ;;  %s3735_s10 = int_to_ptr.vmem [resolvable:$false] %s3734_s10 }
  0x2c   : > { %s485_s16 = scalar_lea.hbm %s4651_s5, %s3188_s19  ;;  %p3732_p0 = pnand %p3730_p13, %p3718_p12 }
  0x2d   : > { %s3736_s8 = scalar_lea.vmem %s3735_s10, 2048  ;;  %p3737_p2 = scmp.lt.s32.totalorder %s487_s21, %s3735_s10 }
  0x2e   : > { %p3733_p1 = pneg %p3732_p0  ;;  %p3738_p3 = scmp.lt.s32.totalorder %s3736_s8, %s3729_s13 }
  0x30   : > { %p3739_p4 = por %p3738_p3, %p3737_p2 }
  0x32   : > { %p3740_p5 = pnand %p3739_p4, %p3733_p1 }
  0x34   : > { %3743 = shalt.err (!%p3740_p5)
}
  0x35   : > { %s4623_s14 = smov 64   ;;  %s4624_s17 = smov 4  }
  0x36   : > { %3439 = dma.hbm_to_vmem [thread:$0]  (!%p4057_p10), %s485_s16, 1024, %s487_s21, %s4067_s27, %s4623_s14, %s4623_s14, %s4624_s17  }
  0x37   : > { %p567_p6 = scmp.lt.s32.totalorder %s3902_s15, 5  ;;  %s3421_s10 = smul.u32 192, %s4050_s22 }
  0x38   : > { %s3422_s12 = smul.u32 3072, %s3894_s30  ;;  %s4653_s3 = sld [smem:[#allocation22_spill]] }
  0x39   : > { %p4083_p7 = pnand %p3058_p11, %p567_p6  ;;  %s451_s25 = scalar_lea.vmem [#allocation2], %s3421_s10 }
  0x3a   : > { %s458_s19 = sshll.u32 %s451_s25, 4  ;;  %s3052_s5 = sshll.u32 %s4050_s22, 8  ;;  %s459_s19 = int_to_ptr.vmem [resolvable:$true] %s458_s19 }
  0x3b   : > { %s448_s7 = scalar_lea.sflag [#allocation3], %s4050_s22  ;;  %s3757_s4 = scalar_lea.vmem %s459_s19, 3072 }
  0x3c   : > { %p3758_p8 = scmp.ne.s32.totalorder %s459_s19, %s3757_s4  ;;  %s3907_s16 = smov [#allocation2]  }
  0x3d   : > { %s3762_s21 = sshll.u32 %s3907_s16, 4  ;;  %s3763_s21 = int_to_ptr.vmem [resolvable:$false] %s3762_s21 }
  0x3e   : > { %s457_s24 = scalar_lea.hbm %s4653_s3, %s3422_s12  ;;  %p3760_p13 = pnand %p3758_p8, %p3718_p12 }
  0x3f   : > { %s3764_s14 = scalar_lea.vmem %s3763_s21, 6144  ;;  %p3765_p0 = scmp.lt.s32.totalorder %s459_s19, %s3763_s21 }
  0x40   : > { %p3761_p11 = pneg %p3760_p13  ;;  %p3766_p1 = scmp.lt.s32.totalorder %s3764_s14, %s3757_s4 }
  0x42   : > { %p3767_p2 = por %p3766_p1, %p3765_p0 }
  0x44   : > { %p3768_p3 = pnand %p3767_p2, %p3761_p11 }
  0x46   : > { %3771 = shalt.err (!%p3768_p3)
}
  0x47   : > { %s3908_s10 = smov 192   ;;  %s3909_s12 = smov 12  }
  0x48   : > { %3436 = dma.hbm_to_vmem [thread:$0]  (!%p4057_p10), %s457_s24, 3072, %s459_s19, %s448_s7, %s3908_s10, %s3908_s10, %s3909_s12  }
  0x49   : > { %s3189_s13 = sshll.u32 %s3894_s30, 12  ;;  %s4654_s9 = sld [smem:[#allocation28_spill]] }
  0x4a   : > { %s518_s17 = scalar_lea.vmem [#allocation6], %s3052_s5  ;;  %s3910_s14 = smov [#allocation6]  }
  0x4b   : > { %s525_s21 = sshll.u32 %s518_s17, 4  ;;  %s3790_s3 = sshll.u32 %s3910_s14, 4  ;;  %s526_s21 = int_to_ptr.vmem [resolvable:$true] %s525_s21  ;;  %s3791_s3 = int_to_ptr.vmem [resolvable:$false] %s3790_s3 }
  0x4c   : > { %s3785_s4 = scalar_lea.vmem %s526_s21, 4096  ;;  %s3792_s6 = scalar_lea.vmem %s3791_s3, 8192 }
  0x4d   : > { %p3786_p4 = scmp.ne.s32.totalorder %s526_s21, %s3785_s4  ;;  %p3793_p8 = scmp.lt.s32.totalorder %s526_s21, %s3791_s3 }
  0x4e   : > { %p3794_p13 = scmp.lt.s32.totalorder %s3792_s6, %s3785_s4 }
  0x4f   : > { %s524_s16 = scalar_lea.hbm %s4654_s9, %s3189_s13  ;;  %p3788_p5 = pnand %p3786_p4, %p3718_p12 }
  0x50   : > { %p3795_p11 = por %p3794_p13, %p3793_p8 }
  0x51   : > { %p3789_p6 = pneg %p3788_p5 }
  0x53   : > { %p3796_p0 = pnand %p3795_p11, %p3789_p6 }
  0x55   : > { %3799 = shalt.err (!%p3796_p0)
}
  0x56   : > { %s3911_s7 = smov 256   ;;  %s3912_s17 = smov 16  }
  0x57   : > { %3442 = dma.hbm_to_vmem [thread:$0]  (!%p4057_p10), %s524_s16, 4096, %s526_s21, %s4067_s27, %s3911_s7, %s3911_s7, %s3912_s17  }
  0x58   : > { %s4655_s11 = sld [smem:[#allocation30_spill]]  ;;  %s546_s12 = scalar_lea.vmem [#allocation7], %s3052_s5 }
  0x59   : > { %s553_s3 = sshll.u32 %s546_s12, 4  ;;  %s543_s6 = scalar_lea.sflag [#allocation8], %s4050_s22  ;;  %s554_s3 = int_to_ptr.vmem [resolvable:$true] %s553_s3 }
  0x5a   : > { %s3813_s18 = scalar_lea.vmem %s554_s3, 4096  ;;  %s3913_s25 = smov [#allocation7]  }
  0x5b   : > { %p3814_p1 = scmp.ne.s32.totalorder %s554_s3, %s3813_s18  ;;  %s3818_s4 = sshll.u32 %s3913_s25, 4  ;;  %s3819_s4 = int_to_ptr.vmem [resolvable:$false] %s3818_s4 }
  0x5c   : > { %s3820_s14 = scalar_lea.vmem %s3819_s4, 8192  ;;  %p3821_p4 = scmp.lt.s32.totalorder %s554_s3, %s3819_s4 }
  0x5d   : > { %p3816_p2 = pnand %p3814_p1, %p3718_p12  ;;  %p3822_p5 = scmp.lt.s32.totalorder %s3820_s14, %s3813_s18 }
  0x5e   : > { %s552_s10 = scalar_lea.hbm %s4655_s11, %s3189_s13 }
  0x5f   : > { %p3817_p3 = pneg %p3816_p2  ;;  %p3823_p6 = por %p3822_p5, %p3821_p4 }
  0x61   : > { %p3824_p8 = pnand %p3823_p6, %p3817_p3 }
  0x63   : > { %3827 = shalt.err (!%p3824_p8)
}
  0x64   : > { %s4656_s5 = smov 4   ;;  %s4657_s27 = smov 64  }
  0x65   : > { %3445 = dma.hbm_to_vmem [thread:$0]  (!%p4057_p10), %s552_s10, 4096, %s554_s3, %s543_s6, %s4657_s27, %s4657_s27, %s4656_s5  }
  0x66   : > { %571 = sbr.rel (%p4083_p7) target bundleno = 3982 (0xf8e), region = 72 }
  0x6b   : > { %s573_s22 = sand.u32 1, %s3878_s26  }
  0x6c   : > { %s3423_s13 = smul.u32 192, %s573_s22  ;;  %s574_s16 = scalar_lea.sflag [#allocation3], %s573_s22 }
  0x6e   : > { %s4128_s21 = scalar_lea.vmem [#allocation2], %s3423_s13 }
  0x6f   : > { %3861 = dma.done.wait (%p4052_p9), %s574_s16, 3072  }
  0x70   : > { %3863 = vsyncadd (%p4052_p9), %s574_s16, 4294964224  ;;  %s4658_s20 = sadd.s32 4294967295, %s3902_s15   ;;  %s3059_s17 = sshll.u32 %s573_s22, 6 }
  0x71   : > { %s582_s7 = sand.u32 1, %s4658_s20   ;;  %s4136_s8 = scalar_lea.vmem [#allocation4], %s3059_s17 }
  0x72   : > { %s583_s24 = scalar_lea.sflag [#allocation5], %s582_s7 }
  0x73   : > { %3865 = dma.done.wait (%p4052_p9), %s583_s24, 5120  }
  0x74   : > { %3867 = vsyncadd (%p4052_p9), %s583_s24, 4294962176  ;;  %s3060_s19 = sshll.u32 %s573_s22, 8  ;;  %s601_s12 = scalar_lea.sflag [#allocation8], %s573_s22 }
  0x75   : > { %s4142_s10 = scalar_lea.vmem [#allocation6], %s3060_s19  ;;  %s4144_s3 = scalar_lea.vmem [#allocation7], %s3060_s19 }
  0x76   : > { %4659 = sst [smem:[#allocation20_spill]] %s4144_s3 }
  0x77   : > { %3869 = dma.done.wait (%p4052_p9), %s601_s12, 4096  }
  0x78   : > { %3871 = vsyncadd (%p4052_p9), %s601_s12, 4294963200  ;;  %s3062_s6 = sshll.u32 %s3890_s29, 1  ;;  %p699_p10 = scmp.lt.s32.totalorder %s3886_s28, 1 }
  0x79   : > { %p694_p12 = scmp.lt.s32.totalorder %s3062_s6, 3  ;;  %s4660_s0 = sld [smem:[#allocation21_spill]] }
  0x7a   : > { %s4153_s18 = scalar_select %p699_p10, %s3886_s28, 1 }
  0x7b   : > { %s4691_s6 = smov (!%p694_p12, %s3062_s6), 3  ;;  %s4662_s11 = sld [smem:[#allocation23_spill]] }
  0x7c   : > { %s3063_s27 = sshll.u32 %s4691_s6, 3  ;;  %s3424_s22 = smul.u32 3, %s4153_s18 }
  0x7d   : > { %s4663_s4 = sld [smem:[#allocation26_spill]]  ;;  %s3064_s15 = sshll.u32 %s4153_s18, 2 }
  0x7e   : > { %s4664_s29 = sld [smem:[#allocation27_spill]]  ;;  %p3067_p9 = scmp.ne.s32.totalorder %s3886_s28, 0 }
  0x7f   : > { %s697_s20 = scalar_lea.vmem %s4660_s0, %s3063_s27  ;;  %s4665_s0 = sld [smem:[#allocation29_spill]] }
  0x80   : > { %s4666_s24 = sld [smem:[#allocation31_spill]] }
  0x81   : > { %s4174_s30 = scalar_lea.vmem %s4662_s11, %s3424_s22  ;;  %s4667_s12 = sld [smem:[#allocation32_spill]] }
  0x83   : > { %s714_s14 = scalar_lea.vmem %s4663_s4, %s4153_s18  ;;  %735 = sbr.rel (%p3067_p9) target bundleno = 138 (0x8a), region = 92 }
  0x84   : > { %s717_s26 = scalar_lea.vmem %s4664_s29, %s4153_s18 }
  0x85   : > { %s4188_s3 = scalar_lea.vmem %s4665_s0, %s3064_s15 }
  0x86   : > { %s724_s9 = scalar_lea.vmem %s4666_s24, %s4153_s18 }
  0x87   : > { %s4197_s19 = scalar_lea.vmem %s4667_s12, %s3063_s27 }
  0x88   : > { %v736_v0 = vld [vmem:[%s697_s20] sm:$0xff]  ;;  %v737_v1 = vld [vmem:[%s697_s20 + $0x8] sm:$0xff] }
  0x89   : > { %738 = vst [vmem:[%s4197_s19] sm:$0xff] %v736_v0  ;;  %739 = vst [vmem:[%s4197_s19 + $0x8] sm:$0xff] %v737_v1 }
  0x8a PF: > { %v3538_v4 = vld [vmem:[%s4128_s21 + $0xac] ss:$12 sps:$4 sm:$0xff]   ;;  %v3540_v5 = vld [vmem:[%s4128_s21 + $0xa8] ss:$12 sps:$4 sm:$0xff]   ;;  %v3914_v6 = vmov 0.0   ;;  %v3915_v29 = vmov 0   ;;  %s4668_s15 = scalar_lea.vmem %s4606_s1, %s4153_s18  ;;  %s4669_s29 = scalar_lea.vmem %s4607_s2, %s4153_s18  ;;  %v818_v55 = vlaneseq }
  0x8b   : > { %3285 = vmatprep.subr.bf16.mxu1 %v3914_v6  ;;  %v3541_v7 = vld [vmem:[%s4128_s21 + $0xb0] ss:$12 sps:$4 sm:$0xff]   ;;  %961 = vmatprep.subr.bf16.mxu0 %v3538_v4  ;;  %v3542_v16 = vld [vmem:[%s4128_s21 + $0x94] ss:$12 sps:$4 sm:$0xff]   ;;  %v3545_v18 = vld [vmem:[%s4128_s21 + $0x98] ss:$12 sps:$4 sm:$0xff]  }
  0x8c   : > { %962 = vmatpush1.bf16.msra.mxu0 %v3540_v5  ;;  %3286 = vmatpush3.bf16.msra.mxu1 %v3541_v7  ;;  %v3544_v17 = vld [vmem:[%s4128_s21 + $0x90] ss:$12 sps:$4 sm:$0xff]   ;;  %v3548_v20 = vld [vmem:[%s4128_s21 + $0x78] ss:$12 sps:$4 sm:$0xff]   ;;  %v3549_v21 = vld [vmem:[%s4128_s21 + $0x80] ss:$12 sps:$4 sm:$0xff]  }
  0x8d   : > { %3287 = vmatprep.subr.bf16.mxu1 %v3914_v6  ;;  %963 = vmatprep.subr.bf16.mxu0 %v3542_v16  ;;  %v3546_v19 = vld [vmem:[%s4128_s21 + $0x7c] ss:$12 sps:$4 sm:$0xff]   ;;  %v3550_v22 = vld [vmem:[%s4128_s21 + $0x64] ss:$12 sps:$4 sm:$0xff]   ;;  %v3552_v23 = vld [vmem:[%s4128_s21 + $0x60] ss:$12 sps:$4 sm:$0xff]  }
  0x8e   : > { %v3553_v24 = vld [vmem:[%s4128_s21 + $0x68] ss:$12 sps:$4 sm:$0xff]   ;;  %v3554_v25 = vld [vmem:[%s4128_s21 + $0x4c] ss:$12 sps:$4 sm:$0xff]   ;;  %v3557_v27 = vld [vmem:[%s4128_s21 + $0x50] ss:$12 sps:$4 sm:$0xff]   ;;  %993 = vmatprep.mubr.bf16.mxu0 %v3915_v29 }
  0x8f   : > { %v3556_v26 = vld [vmem:[%s4128_s21 + $0x48] ss:$12 sps:$4 sm:$0xff]   ;;  %vm3916_vm0 = vmmov 0   ;;  %v3560_v30 = vld [vmem:[%s4128_s21 + $0x30] ss:$12 sps:$4 sm:$0xff]   ;;  %v4265_v56 = vshrl.u32 %v818_v55, 7 }
  0x90   : > { %v740_v2 = vld [vmem:[%s4197_s19] sm:$0xff]  ;;  %v741_v3 = vld [vmem:[%s4197_s19 + $0x8] sm:$0xff]  ;;  %964 = vmatpush1.bf16.msra.mxu0 %v3544_v17  ;;  %3288 = vmatpush3.bf16.msra.mxu1 %v3545_v18  ;;  %vm1051_vm1 = vcmask 261120   ;;  %vm1172_vm2 = vcmask 1043456   ;;  %vm1144_vm3 = vcmask 64512   ;;  %s3918_s27 = smov 64  }
  0x91   : > { %744 = vadd.xlane.f32.xlu0 %v740_v2  ;;  %3289 = vmatprep.subr.bf16.mxu1 %v3914_v6  ;;  %v3558_v28 = vld [vmem:[%s4128_s21 + $0x34] ss:$12 sps:$4 sm:$0xff]   ;;  %v3561_v31 = vld [vmem:[%s4128_s21 + $0x38] ss:$12 sps:$4 sm:$0xff]   ;;  %v3562_v32 = vld [vmem:[%s4128_s21 + $0x1c] ss:$12 sps:$4 sm:$0xff]  }
  0x92   : > { %965 = vmatprep.subr.bf16.mxu0 %v3546_v19  ;;  %3301 = vmatprep.mubr.msk.bf16.mxu1 %vm3916_vm0, %v3914_v6  ;;  %v3564_v33 = vld [vmem:[%s4128_s21 + $0x18] ss:$12 sps:$4 sm:$0xff]   ;;  %v3565_v34 = vld [vmem:[%s4128_s21 + $0x20] ss:$12 sps:$4 sm:$0xff]   ;;  %v3569_v37 = vld [vmem:[%s4128_s21 + $0x8] ss:$12 sps:$4 sm:$0xff]  }
  0x93   : > { %v3566_v35 = vld [vmem:[%s4128_s21 + $0x4] ss:$12 sps:$4 sm:$0xff]   ;;  %v3568_v36 = vld [vmem:[%s4128_s21] ss:$12 sps:$4 sm:$0xff]   ;;  %v824_v57 = vsub.s32 1, %v4265_v56  ;;  %v828_v59 = vsub.s32 2, %v4265_v56 }
  0x94   : > { %966 = vmatpush1.bf16.msra.mxu0 %v3548_v20  ;;  %3290 = vmatpush3.bf16.msra.mxu1 %v3549_v21  ;;  %v3068_v46 = vld [vmem:[%s4668_s15] ss:$0 sm:$0xff]  ;;  %v820_v63 = vsub.s32 0, %v4265_v56  ;;  %s3919_s20 = smov 32   ;;  %vm1954_vm4 = vcmask 523264   ;;  %vm1957_vm5 = vcmask 785408  }
  0x95   : > { %746 = vadd.xlane.f32.xlu0 %v741_v3  ;;  %3291 = vmatprep.subr.bf16.mxu1 %v3914_v6  ;;  %v3069_v50 = vld [vmem:[%s4669_s29] ss:$0 sm:$0xff]  ;;  %s4670_s23 = sld [smem:[#allocation25_spill]] }
  0x96   : > { %967 = vmatprep.subr.bf16.mxu0 %v3550_v22  ;;  %v816_v58 = vld [vmem:[%s4174_s30] sm:$0x7]  ;;  %s3917_s30 = smov 96   ;;  %s4672_s6 = sld [smem:[#allocation20_spill]] }
  0x97   : > { %v825_v60 = vrot.slane %v816_v58, %v824_v57  ;;  %v821_v7 = vrot.slane %v816_v58, %v820_v63 }
  0x98   : > { %968 = vmatpush1.bf16.msra.mxu0 %v3552_v23  ;;  %3292 = vmatpush3.bf16.msra.mxu1 %v3553_v24 }
  0x99   : > { %969 = vmatprep.subr.bf16.mxu0 %v3554_v25  ;;  %3293 = vmatprep.subr.bf16.mxu1 %v3914_v6 }
  0x9b   : > { %s4671_s5 = scalar_lea.vmem %s4670_s23, %s4153_s18 }
  0x9c   : > { %970 = vmatpush1.bf16.msra.mxu0 %v3556_v26  ;;  %3294 = vmatpush3.bf16.msra.mxu1 %v3557_v27 }
  0x9d   : > { %971 = vmatprep.subr.bf16.mxu0 %v3558_v28  ;;  %3295 = vmatprep.subr.bf16.mxu1 %v3914_v6 }
  0xa0   : > { %972 = vmatpush1.bf16.msra.mxu0 %v3560_v30  ;;  %3296 = vmatpush3.bf16.msra.mxu1 %v3561_v31 }
  0xa1   : > { %973 = vmatprep.subr.bf16.mxu0 %v3562_v32  ;;  %3297 = vmatprep.subr.bf16.mxu1 %v3914_v6 }
  0xa4   : > { %974 = vmatpush1.bf16.msra.mxu0 %v3564_v33  ;;  %3298 = vmatpush3.bf16.msra.mxu1 %v3565_v34 }
  0xa5   : > { %975 = vmatprep.subr.bf16.mxu0 %v3566_v35  ;;  %3299 = vmatprep.subr.bf16.mxu1 %v3914_v6 }
  0xa8   : > { %976 = vmatpush1.bf16.msra.mxu0 %v3568_v36  ;;  %3300 = vmatpush3.bf16.msra.mxu1 %v3569_v37 }
  0xa9   : > { %3305 = vmatprep.subr.bf16.mxu1 %v3914_v6  ;;  %3329 = vmatprep.subr.bf16.mxu0 %v3914_v6 }
 0x11a   : > { %v745_v8 = vpop.xlane.xlu0 %744 }
 0x11b   : > { %v749_v9 = vmul.f32 0.0078125, %v745_v8 }
 0x11d   : > { %v4209_v10 = vsub.f32 %v740_v2, %v749_v9  ;;  %v829_v2 = vrot.slane %v816_v58, %v828_v59 }
 0x11e   : > { %v747_v11 = vpop.xlane.xlu0 %746 }
 0x11f   : > { %v750_v12 = vmul.f32 0.0078125, %v747_v11  ;;  %v753_v13 = vmul.f32 %v4209_v10, %v4209_v10 }
 0x121   : > { %v4213_v14 = vsub.f32 %v741_v3, %v750_v12  ;;  %755 = vadd.xlane.f32.xlu1 %v753_v13 }
 0x123   : > { %v754_v15 = vmul.f32 %v4213_v14, %v4213_v14 }
 0x125   : > { %757 = vadd.xlane.f32.xlu1 %v754_v15 }
 0x1aa   : > { %v756_v38 = vpop.xlane.xlu1 %755 }
 0x1ab   : > { %v759_v39 = vmul.f32 0.0078125, %v756_v38 }
 0x1ad   : > { %v761_v40 = vadd.f32 1e-05, %v759_v39 }
 0x1ae   : > { %v758_v41 = vpop.xlane.xlu1 %757 }
 0x1af   : > { %3658 = vrsqrt.f32 %v761_v40  ;;  %v760_v42 = vmul.f32 0.0078125, %v758_v41 }
 0x1b1   : > { %v762_v43 = vadd.f32 1e-05, %v760_v42 }
 0x1b3   : > { %3660 = vrsqrt.f32 %v762_v43 }
 0x1bc   : > { %v3659_v44 = vpop.eup %3658 }
 0x1bd   : > { %v765_v45 = vmul.f32 %v3659_v44, %v4209_v10 }
 0x1bf   : > { %v773_v49 = vmul.f32 %v3068_v46, %v765_v45 }
 0x1c0   : > { %v3661_v47 = vpop.eup %3660 }
 0x1c1   : > { %v766_v48 = vmul.f32 %v3661_v47, %v4213_v14  ;;  %v781_v52 = vadd.f32 %v3069_v50, %v773_v49 }
 0x1c3   : > { %v774_v51 = vmul.f32 %v3068_v46, %v766_v48 }
 0x1c5   : > { %v782_v53 = vadd.f32 %v3069_v50, %v774_v51 }
 0x1c7   : > { %v783_v54 = vpack.c.bf16 %v782_v53, %v781_v52 }
 0x1c9   : > { %994 = vmatmul.mubr.bf16.vlgmr.msra.gmra.mxu0 %v783_v54  ;;  %3302 = vmatmul.mubr.bf16.vlgmr.msra.gmra.mxu1 %v783_v54 }
 0x1ca   : > { %3307 = vmatprep.mubr.msk.bf16.mxu1 %vm3916_vm0, %v3914_v6  ;;  %3331 = vmatprep.mubr.msk.bf16.mxu0 %vm3916_vm0, %v3914_v6 }
 0x289   : > { %v995_v61 = vpop.f32.mrf.mxu0  ;;  %v1038_v62 = vpop.f32.mrf.mxu1 }
 0x28a   : > { %v996_v14 = vadd.f32 %v995_v61, %v821_v7  ;;  %v1039_v17 = vadd.f32 %v1038_v62, %v829_v2 }
 0x28b   : > { %v997_v0 = vpop.f32.mrf.mxu0  ;;  %v3303_v1 = vpop.f32.mrf.mxu1 }
 0x28c   : > { %v998_v3 = vadd.f32 %v997_v0, %v825_v60  ;;  %v4286_v16 = vpack.c.bf16 %v996_v14, %v996_v14  ;;  %v4295_v20 = vpack.c.bf16 %v1039_v17, %v1039_v17 }
 0x28d   : > { %v999_v4 = vpop.f32.mrf.mxu0  ;;  %v1041_v5 = vpop.f32.mrf.mxu1 }
 0x28e   : > { %v4277_v8 = vpack.c.bf16 %v998_v3, %v998_v3  ;;  %v4279_v9 = vadd.f32 %v1041_v5, %v829_v2  ;;  %v1000_v19 = vadd.f32 %v999_v4, %v821_v7  ;;  %v1174_v22 = vsel %vm1172_vm2, %v4295_v20, 0 }
 0x28f   : > { %v1001_v10 = vpop.f32.mrf.mxu0  ;;  %v3304_v11 = vpop.f32.mrf.mxu1 }
 0x290   : > { %v1002_v12 = vadd.f32 %v1001_v10, %v825_v60  ;;  %v1056_v13 = vsel %vm1051_vm1, %v4277_v8, 0  ;;  %v4297_v21 = vpack.c.bf16 %v1000_v19, %v1000_v19  ;;  %v4325_v51 = vpack.c.bf16 %v4279_v9, %v4279_v9 }
 0x291   : > { %3306 = vmatpush3.bf16.xpose.msra.mxu1 %v1056_v13 }
 0x292   : > { %3311 = vmatprep.subr.bf16.mxu1 %v3914_v6  ;;  %v4284_v15 = vpack.c.bf16 %v1002_v12, %v1002_v12  ;;  %v1220_v54 = vsel %vm1172_vm2, %v4325_v51, 0 }
 0x294   : > { %v1102_v18 = vsel %vm1051_vm1, %v4284_v15, 0 }
 0x298   : > { %3308 = vmatmul.mubr.msk.bf16.vlgmr.msra.gmra.mxu1 %vm1051_vm1, %v4286_v16 }
 0x299   : > { %3312 = vmatpush3.bf16.xpose.msra.mxu1 %v1102_v18  ;;  %3313 = vmatprep.mubr.msk.bf16.mxu1 %vm3916_vm0, %v3914_v6 }
 0x29a   : > { %3317 = vmatprep.subr.bf16.mxu1 %v3914_v6 }
 0x2a0   : > { %3314 = vmatmul.mubr.msk.bf16.vlgmr.msra.gmra.mxu1 %vm1051_vm1, %v4297_v21 }
 0x2a1   : > { %3318 = vmatpush3.bf16.msra.mxu1 %v1174_v22  ;;  %3319 = vmatprep.mubr.msk.bf16.mxu1 %vm3916_vm0, %v3914_v6 }
 0x2a2   : > { %3323 = vmatprep.subr.bf16.mxu1 %v3914_v6 }
 0x358   : > { %v1092_v23 = vpop.f32.mrf.mxu1 }
 0x359   : > { %v1145_v24 = vsel %vm1144_vm3, %v1092_v23, -inf }
 0x35a   : > { %1146 = vmax.xlane.f32.xlu0 %v1145_v24  ;;  %v3309_v25 = vpop.f32.mrf.mxu1 }
 0x35c   : > { %v1095_v26 = vpop.f32.mrf.mxu1 }
 0x35e   : > { %v3310_v27 = vpop.f32.mrf.mxu1 }
 0x360   : > { %v1138_v28 = vpop.f32.mrf.mxu1 }
 0x361   : > { %v1148_v30 = vsel %vm1144_vm3, %v1138_v28, -inf }
 0x362   : > { %1149 = vmax.xlane.f32.xlu1 %v1148_v30  ;;  %v3315_v31 = vpop.f32.mrf.mxu1 }
 0x364   : > { %v1141_v32 = vpop.f32.mrf.mxu1 }
 0x366   : > { %v3316_v33 = vpop.f32.mrf.mxu1 }
 0x373   : > { %1318 = vrot.lane.b32.xlu1 %v4284_v15, %s3917_s30 }
 0x3e3   : > { %v1147_v34 = vpop.xlane.xlu0 %1146 }
 0x3e4   : > { %v1151_v35 = vsub.f32 %v1092_v23, %v1147_v34 }
 0x3e6   : > { %v1153_v36 = vmul.f32 1.442695, %v1151_v35 }
 0x3e8   : > { %3662 = vpow2.f32 %v1153_v36 }
 0x3eb   : > { %v1150_v37 = vpop.xlane.xlu1 %1149 }
 0x3ec   : > { %v1152_v38 = vsub.f32 %v1138_v28, %v1150_v37 }
 0x3ee   : > { %v1155_v39 = vmul.f32 1.442695, %v1152_v38 }
 0x3ef   : > { %v1319_v45 = vpop.permute.xlu1 %1318 }
 0x3f0   : > { %3664 = vpow2.f32 %v1155_v39  ;;  %v1324_v61 = vsel %vm1051_vm1, %v1319_v45, 0 }
 0x3f5   : > { %v3663_v40 = vpop.eup %3662 }
 0x3f6   : > { %v1157_v41 = vsel %vm1144_vm3, %v3663_v40, 0.0 }
 0x3f7   : > { %1158 = vadd.xlane.f32.xlu0 %v1157_v41 }
 0x3fd   : > { %v3665_v42 = vpop.eup %3664 }
 0x3fe   : > { %v1160_v43 = vsel %vm1144_vm3, %v3665_v42, 0.0 }
 0x3ff   : > { %1161 = vadd.xlane.f32.xlu1 %v1160_v43 }
 0x40d   : > { %1266 = vrot.lane.b32.xlu0 %v4277_v8, %s3917_s30 }
 0x410   : > { %1263 = vrot.lane.b32.xlu1 %v4286_v16, %s3917_s30 }
 0x414   : > { %1315 = vrot.lane.b32.xlu1 %v4297_v21, %s3917_s30 }
 0x480   : > { %v1159_v44 = vpop.xlane.xlu0 %1158 }
 0x481   : > { %3666 = vrcp.f32 %v1159_v44 }
 0x484   : > { %v1267_v46 = vpop.permute.xlu0 %1266 }
 0x485   : > { %v1272_v47 = vsel %vm1051_vm1, %v1267_v46, 0 }
 0x486   : > { %3330 = vmatpush3.bf16.xpose.msra.mxu0 %v1272_v47 }
 0x487   : > { %3341 = vmatprep.subr.bf16.mxu0 %v3914_v6 }
 0x488   : > { %v1162_v48 = vpop.xlane.xlu1 %1161 }
 0x489   : > { %3668 = vrcp.f32 %v1162_v48 }
 0x48c   : > { %v1264_v49 = vpop.permute.xlu1 %1263 }
 0x48d   : > { %3332 = vmatmul.mubr.msk.bf16.vlgmr.msra.gmra.mxu0 %vm1051_vm1, %v1264_v49 }
 0x48e   : > { %v3667_v50 = vpop.eup %3666  ;;  %3343 = vmatprep.mubr.msk.bf16.mxu0 %vm3916_vm0, %v3914_v6 }
 0x48f   : > { %v1165_v52 = vmul.f32 %v3667_v50, %v3663_v40 }
 0x490   : > { %v1316_v62 = vpop.permute.xlu1 %1315 }
 0x491   : > { %v1167_v53 = vpack.c.bf16 %v1165_v52, %v1165_v52 }
 0x493   : > { %3320 = vmatmul.mubr.msk.bf16.vlgmr.msra.gmra.mxu1 %vm1144_vm3, %v1167_v53 }
 0x494   : > { %3324 = vmatpush3.bf16.msra.mxu1 %v1220_v54  ;;  %3325 = vmatprep.mubr.msk.bf16.mxu1 %vm3916_vm0, %v3914_v6 }
 0x495   : > { %3335 = vmatprep.subr.bf16.mxu1 %v3914_v6 }
 0x496   : > { %v3669_v55 = vpop.eup %3668 }
 0x497   : > { %v1166_v58 = vmul.f32 %v3669_v55, %v3665_v42 }
 0x499   : > { %v1168_v60 = vpack.c.bf16 %v1166_v58, %v1166_v58 }
 0x49b   : > { %3326 = vmatmul.mubr.msk.bf16.vlgmr.msra.gmra.mxu1 %vm1144_vm3, %v1168_v60 }
 0x49c   : > { %3336 = vmatpush3.bf16.xpose.msra.mxu1 %v1324_v61  ;;  %3337 = vmatprep.mubr.msk.bf16.mxu1 %vm3916_vm0, %v3914_v6 }
 0x49d   : > { %3347 = vmatprep.subr.bf16.mxu1 %v3914_v6 }
 0x4a3   : > { %3338 = vmatmul.mubr.msk.bf16.vlgmr.msra.gmra.mxu1 %vm1051_vm1, %v1316_v62 }
 0x4a4   : > { %3349 = vmatprep.mubr.msk.bf16.mxu1 %vm3916_vm0, %v3914_v6 }
 0x54d   : > { %v1308_v0 = vpop.f32.mrf.mxu0 }
 0x54e   : > { %v1366_v1 = vsel %vm1144_vm3, %v1308_v0, -inf }
 0x54f   : > { %1367 = vmax.xlane.f32.xlu0 %v1366_v1  ;;  %v3333_v2 = vpop.f32.mrf.mxu0 }
 0x551   : > { %v1311_v3 = vpop.f32.mrf.mxu0 }
 0x553   : > { %v4342_v4 = vpop.f32.mrf.mxu1  ;;  %v3334_v5 = vpop.f32.mrf.mxu0 }
 0x555   : > { %v3321_v7 = vpop.f32.mrf.mxu1 }
 0x557   : > { %v1213_v9 = vpop.f32.mrf.mxu1 }
 0x559   : > { %v3322_v10 = vpop.f32.mrf.mxu1 }
 0x55b   : > { %v4344_v11 = vpop.f32.mrf.mxu1 }
 0x55d   : > { %v3327_v12 = vpop.f32.mrf.mxu1 }
 0x55f   : > { %v1259_v13 = vpop.f32.mrf.mxu1 }
 0x561   : > { %v3328_v14 = vpop.f32.mrf.mxu1 }
 0x563   : > { %v1360_v17 = vpop.f32.mrf.mxu1 }
 0x564   : > { %v1369_v18 = vsel %vm1144_vm3, %v1360_v17, -inf }
 0x565   : > { %1370 = vmax.xlane.f32.xlu1 %v1369_v18  ;;  %v3339_v19 = vpop.f32.mrf.mxu1 }
 0x567   : > { %v1363_v22 = vpop.f32.mrf.mxu1 }
 0x569   : > { %v3340_v23 = vpop.f32.mrf.mxu1 }
 0x576   : > { %1440 = vrot.lane.b32.xlu1 %v4325_v51, %s3917_s30 }
 0x57a   : > { %1490 = vrot.lane.b32.xlu1 %v4277_v8, %s3918_s27 }
 0x57e   : > { %1540 = vrot.lane.b32.xlu1 %v4284_v15, %s3918_s27 }
 0x582   : > { %1538 = vrot.lane.b32.xlu1 %v4297_v21, %s3918_s27 }
 0x5d8   : > { %v1368_v24 = vpop.xlane.xlu0 %1367 }
 0x5d9   : > { %v1372_v25 = vsub.f32 %v1308_v0, %v1368_v24 }
 0x5db   : > { %v1374_v26 = vmul.f32 1.442695, %v1372_v25 }
 0x5dd   : > { %3670 = vpow2.f32 %v1374_v26 }
 0x5ea   : > { %v3671_v27 = vpop.eup %3670 }
 0x5eb   : > { %v1378_v28 = vsel %vm1144_vm3, %v3671_v27, 0.0 }
 0x5ec   : > { %1379 = vadd.xlane.f32.xlu0 %v1378_v28 }
 0x5ee   : > { %v1371_v30 = vpop.xlane.xlu1 %1370 }
 0x5ef   : > { %v1373_v31 = vsub.f32 %v1360_v17, %v1371_v30 }
 0x5f1   : > { %v1376_v32 = vmul.f32 1.442695, %v1373_v31 }
 0x5f2   : > { %v1441_v33 = vpop.permute.xlu1 %1440 }
 0x5f3   : > { %3672 = vpow2.f32 %v1376_v32  ;;  %v1446_v34 = vsel %vm1172_vm2, %v1441_v33, 0 }
 0x5f4   : > { %3348 = vmatpush3.bf16.msra.mxu1 %v1446_v34 }
 0x5f5   : > { %3359 = vmatprep.subr.bf16.mxu1 %v3914_v6 }
 0x5f6   : > { %v1491_v43 = vpop.permute.xlu1 %1490 }
 0x5f7   : > { %v1496_v45 = vsel %vm1051_vm1, %v1491_v43, 0 }
 0x5fa   : > { %v1541_v48 = vpop.permute.xlu1 %1540 }
 0x5fb   : > { %v1546_v52 = vsel %vm1051_vm1, %v1541_v48, 0 }
 0x5fe   : > { %v1539_v53 = vpop.permute.xlu1 %1538 }
 0x600   : > { %v3673_v35 = vpop.eup %3672 }
 0x601   : > { %v1381_v36 = vsel %vm1144_vm3, %v3673_v35, 0.0 }
 0x602   : > { %1382 = vadd.xlane.f32.xlu0 %v1381_v36 }
 0x618   : > { %1391 = vrot.lane.b32.xlu0 %v4295_v20, %s3917_s30 }
 0x61c   : > { %1488 = vrot.lane.b32.xlu0 %v4286_v16, %s3918_s27 }
 0x675   : > { %v1380_v37 = vpop.xlane.xlu0 %1379 }
 0x676   : > { %3674 = vrcp.f32 %v1380_v37 }
 0x683   : > { %v3675_v38 = vpop.eup %3674 }
 0x684   : > { %v1386_v40 = vmul.f32 %v3675_v38, %v3671_v27 }
 0x686   : > { %v1388_v44 = vpack.c.bf16 %v1386_v40, %v1386_v40 }
 0x68b   : > { %v1383_v39 = vpop.xlane.xlu0 %1382 }
 0x68c   : > { %3676 = vrcp.f32 %v1383_v39 }
 0x68f   : > { %v1392_v41 = vpop.permute.xlu0 %1391 }
 0x690   : > { %v1397_v42 = vsel %vm1172_vm2, %v1392_v41, 0 }
 0x691   : > { %3342 = vmatpush3.bf16.msra.mxu0 %v1397_v42 }
 0x692   : > { %3353 = vmatprep.subr.bf16.mxu0 %v3914_v6 }
 0x693   : > { %v1489_v49 = vpop.permute.xlu0 %1488 }
 0x694   : > { %3344 = vmatmul.mubr.msk.bf16.vlgmr.msra.gmra.mxu0 %vm1144_vm3, %v1388_v44 }
 0x695   : > { %3354 = vmatpush3.bf16.xpose.msra.mxu0 %v1496_v45  ;;  %3355 = vmatprep.mubr.msk.bf16.mxu0 %vm3916_vm0, %v3914_v6 }
 0x696   : > { %3365 = vmatprep.subr.bf16.mxu0 %v3914_v6 }
 0x699   : > { %v3677_v46 = vpop.eup %3676 }
 0x69a   : > { %v1387_v47 = vmul.f32 %v3677_v46, %v3673_v35 }
 0x69c   : > { %3356 = vmatmul.mubr.msk.bf16.vlgmr.msra.gmra.mxu0 %vm1051_vm1, %v1489_v49  ;;  %v1389_v50 = vpack.c.bf16 %v1387_v47, %v1387_v47 }
 0x69d   : > { %3367 = vmatprep.mubr.msk.bf16.mxu0 %vm3916_vm0, %v3914_v6 }
 0x69e   : > { %3350 = vmatmul.mubr.msk.bf16.vlgmr.msra.gmra.mxu1 %vm1144_vm3, %v1389_v50 }
 0x69f   : > { %3360 = vmatpush3.bf16.xpose.msra.mxu1 %v1546_v52  ;;  %3361 = vmatprep.mubr.msk.bf16.mxu1 %vm3916_vm0, %v3914_v6 }
 0x6a0   : > { %3371 = vmatprep.subr.bf16.mxu1 %v3914_v6 }
 0x6a6   : > { %3362 = vmatmul.mubr.msk.bf16.vlgmr.msra.gmra.mxu1 %vm1051_vm1, %v1539_v53 }
 0x6a7   : > { %3373 = vmatprep.mubr.msk.bf16.mxu1 %vm3916_vm0, %v3914_v6 }
 0x754   : > { %v4381_v54 = vpop.f32.mrf.mxu0 }
 0x756   : > { %v3345_v55 = vpop.f32.mrf.mxu0 }
 0x758   : > { %v1436_v58 = vpop.f32.mrf.mxu0 }
 0x75a   : > { %v3346_v60 = vpop.f32.mrf.mxu0 }
 0x75c   : > { %v1532_v61 = vpop.f32.mrf.mxu0 }
 0x75d   : > { %v1588_v62 = vsel %vm1144_vm3, %v1532_v61, -inf }
 0x75e   : > { %1589 = vmax.xlane.f32.xlu0 %v1588_v62  ;;  %v4384_v0 = vpop.f32.mrf.mxu1  ;;  %v3357_v1 = vpop.f32.mrf.mxu0 }
 0x75f   : > { %v3523_v2 = vpack.i.bf16 %v4384_v0, %v4381_v54 }
 0x760   : > { %v3351_v3 = vpop.f32.mrf.mxu1  ;;  %v1535_v5 = vpop.f32.mrf.mxu0 }
 0x762   : > { %v1485_v7 = vpop.f32.mrf.mxu1  ;;  %v3358_v9 = vpop.f32.mrf.mxu0 }
 0x764   : > { %v3352_v10 = vpop.f32.mrf.mxu1 }
 0x766   : > { %v1582_v12 = vpop.f32.mrf.mxu1 }
 0x767   : > { %v1591_v13 = vsel %vm1144_vm3, %v1582_v12, -inf }
 0x768   : > { %1592 = vmax.xlane.f32.xlu1 %v1591_v13  ;;  %v3363_v14 = vpop.f32.mrf.mxu1 }
 0x76a   : > { %v1585_v17 = vpop.f32.mrf.mxu1 }
 0x76c   : > { %v3364_v18 = vpop.f32.mrf.mxu1 }
 0x779   : > { %1660 = vrot.lane.b32.xlu1 %v4325_v51, %s3918_s27 }
 0x77d   : > { %1710 = vrot.lane.b32.xlu1 %v4277_v8, %s3919_s20 }
 0x781   : > { %1760 = vrot.lane.b32.xlu1 %v4284_v15, %s3919_s20 }
 0x785   : > { %1758 = vrot.lane.b32.xlu1 %v4297_v21, %s3919_s20 }
 0x7e7   : > { %v1590_v19 = vpop.xlane.xlu0 %1589 }
 0x7e8   : > { %v1594_v22 = vsub.f32 %v1532_v61, %v1590_v19 }
 0x7ea   : > { %v1596_v23 = vmul.f32 1.442695, %v1594_v22 }
 0x7ec   : > { %3678 = vpow2.f32 %v1596_v23 }
 0x7f1   : > { %v1593_v24 = vpop.xlane.xlu1 %1592 }
 0x7f2   : > { %v1595_v25 = vsub.f32 %v1582_v12, %v1593_v24 }
 0x7f4   : > { %v1598_v26 = vmul.f32 1.442695, %v1595_v25 }
 0x7f5   : > { %v1661_v27 = vpop.permute.xlu1 %1660 }
 0x7f6   : > { %3680 = vpow2.f32 %v1598_v26  ;;  %v1666_v28 = vsel %vm1172_vm2, %v1661_v27, 0 }
 0x7f7   : > { %3372 = vmatpush3.bf16.msra.mxu1 %v1666_v28 }
 0x7f8   : > { %3383 = vmatprep.subr.bf16.mxu1 %v3914_v6 }
 0x7f9   : > { %v3679_v8 = vpop.eup %3678  ;;  %v1711_v37 = vpop.permute.xlu1 %1710 }
 0x7fa   : > { %v1600_v15 = vsel %vm1144_vm3, %v3679_v8, 0.0  ;;  %v1716_v39 = vsel %vm1051_vm1, %v1711_v37, 0  ;;  %v3575_v37 = vld [vmem:[%s4136_s8 + $0x10] sm:$0xff]  }
 0x7fb   : > { %1601 = vadd.xlane.f32.xlu0 %v1600_v15 }
 0x7fd   : > { %v1761_v41 = vpop.permute.xlu1 %1760 }
 0x7fe   : > { %v1766_v44 = vsel %vm1051_vm1, %v1761_v41, 0 }
 0x801   : > { %v1759_v45 = vpop.permute.xlu1 %1758 }
 0x803   : > { %v3681_v30 = vpop.eup %3680 }
 0x804   : > { %v1603_v21 = vsel %vm1144_vm3, %v3681_v30, 0.0 }
 0x805   : > { %1604 = vadd.xlane.f32.xlu0 %v1603_v21 }
 0x81b   : > { %1612 = vrot.lane.b32.xlu0 %v4295_v20, %s3918_s27 }
 0x81f   : > { %1708 = vrot.lane.b32.xlu0 %v4286_v16, %s3919_s20 }
 0x884   : > { %v1602_v31 = vpop.xlane.xlu0 %1601 }
 0x885   : > { %3682 = vrcp.f32 %v1602_v31 }
 0x88e   : > { %v1605_v32 = vpop.xlane.xlu0 %1604 }
 0x88f   : > { %3684 = vrcp.f32 %v1605_v32  ;;  %v3570_v32 = vld [vmem:[%s4136_s8 + $0x38] sm:$0xff]  }
 0x892   : > { %v3683_v33 = vpop.eup %3682  ;;  %v1613_v34 = vpop.permute.xlu0 %1612 }
 0x893   : > { %v1618_v35 = vsel %vm1172_vm2, %v1613_v34, 0  ;;  %v1608_v36 = vmul.f32 %v3683_v33, %v3679_v8  ;;  %v3571_v33 = vld [vmem:[%s4136_s8 + $0x30] sm:$0xff]   ;;  %v3572_v34 = vld [vmem:[%s4136_s8 + $0x28] sm:$0xff]  }
 0x894   : > { %3366 = vmatpush3.bf16.msra.mxu0 %v1618_v35  ;;  %v3573_v35 = vld [vmem:[%s4136_s8 + $0x20] sm:$0xff]  }
 0x895   : > { %v1610_v38 = vpack.c.bf16 %v1608_v36, %v1608_v36  ;;  %3377 = vmatprep.subr.bf16.mxu0 %v3914_v6  ;;  %v3574_v36 = vld [vmem:[%s4136_s8 + $0x18] sm:$0xff]  }
 0x896   : > { %v1709_v42 = vpop.permute.xlu0 %1708 }
 0x897   : > { %3368 = vmatmul.mubr.msk.bf16.vlgmr.msra.gmra.mxu0 %vm1144_vm3, %v1610_v38  ;;  %v3576_v38 = vld [vmem:[%s4136_s8 + $0x8] sm:$0xff]  }
 0x898   : > { %3378 = vmatpush3.bf16.xpose.msra.mxu0 %v1716_v39  ;;  %3379 = vmatprep.mubr.msk.bf16.mxu0 %vm3916_vm0, %v3914_v6 }
 0x899   : > { %3389 = vmatprep.subr.bf16.mxu0 %v3914_v6 }
 0x89c   : > { %v3685_v16 = vpop.eup %3684 }
 0x89d   : > { %v1609_v40 = vmul.f32 %v3685_v16, %v3681_v30  ;;  %v3577_v16 = vld [vmem:[%s4136_s8] sm:$0xff]  }
 0x89f   : > { %3380 = vmatmul.mubr.msk.bf16.vlgmr.msra.gmra.mxu0 %vm1051_vm1, %v1709_v42  ;;  %v1611_v43 = vpack.c.bf16 %v1609_v40, %v1609_v40 }
 0x8a0   : > { %3391 = vmatprep.mubr.msk.bf16.mxu0 %vm3916_vm0, %v3914_v6 }
 0x8a1   : > { %3374 = vmatmul.mubr.msk.bf16.vlgmr.msra.gmra.mxu1 %vm1144_vm3, %v1611_v43 }
 0x8a2   : > { %3384 = vmatpush3.bf16.xpose.msra.mxu1 %v1766_v44  ;;  %3385 = vmatprep.mubr.msk.bf16.mxu1 %vm3916_vm0, %v3914_v6 }
 0x8a3   : > { %3395 = vmatprep.subr.bf16.mxu1 %v3914_v6 }
 0x8a9   : > { %3386 = vmatmul.mubr.msk.bf16.vlgmr.msra.gmra.mxu1 %vm1051_vm1, %v1759_v45 }
 0x8aa   : > { %3397 = vmatprep.mubr.msk.bf16.mxu1 %vm3916_vm0, %v3914_v6 }
 0x957   : > { %v1654_v46 = vpop.f32.mrf.mxu0 }
 0x959   : > { %v3369_v47 = vpop.f32.mrf.mxu0 }
 0x95b   : > { %v1657_v48 = vpop.f32.mrf.mxu0 }
 0x95d   : > { %v3370_v49 = vpop.f32.mrf.mxu0 }
 0x95f   : > { %v1752_v50 = vpop.f32.mrf.mxu0 }
 0x960   : > { %v1808_v52 = vsel %vm1144_vm3, %v1752_v50, -inf }
 0x961   : > { %1809 = vmax.xlane.f32.xlu0 %v1808_v52  ;;  %v1702_v53 = vpop.f32.mrf.mxu1  ;;  %v3381_v55 = vpop.f32.mrf.mxu0 }
 0x962   : > { %v3528_v12 = vpack.i.bf16 %v1702_v53, %v1654_v46 }
 0x963   : > { %v3375_v58 = vpop.f32.mrf.mxu1  ;;  %v1755_v60 = vpop.f32.mrf.mxu0 }
 0x965   : > { %v1705_v61 = vpop.f32.mrf.mxu1  ;;  %v3382_v62 = vpop.f32.mrf.mxu0 }
 0x967   : > { %v3376_v1 = vpop.f32.mrf.mxu1 }
 0x969   : > { %v1802_v3 = vpop.f32.mrf.mxu1 }
 0x96a   : > { %v1811_v5 = vsel %vm1144_vm3, %v1802_v3, -inf }
 0x96b   : > { %1812 = vmax.xlane.f32.xlu1 %v1811_v5  ;;  %v3387_v7 = vpop.f32.mrf.mxu1 }
 0x96d   : > { %v1805_v9 = vpop.f32.mrf.mxu1 }
 0x96f   : > { %v3388_v10 = vpop.f32.mrf.mxu1 }
 0x97c   : > { %1880 = vrot.lane.b32.xlu1 %v4325_v51, %s3919_s20 }
 0x980   : > { %3524 = vrot.lane.b32.xlu1 %v3523_v2, %s3919_s20 }
 0x984   : > { %3529 = vrot.lane.b32.xlu1 %v3528_v12, %s3918_s27 }
 0x9ea   : > { %v1810_v13 = vpop.xlane.xlu0 %1809 }
 0x9eb   : > { %v1814_v14 = vsub.f32 %v1752_v50, %v1810_v13  ;;  %v3714_v13 = vld [vmem:[%s4197_s19] sm:$0xff] }
 0x9ed   : > { %v1816_v17 = vmul.f32 1.442695, %v1814_v14 }
 0x9ef   : > { %3686 = vpow2.f32 %v1816_v17 }
 0x9f4   : > { %v1813_v18 = vpop.xlane.xlu1 %1812 }
 0x9f5   : > { %v1815_v19 = vsub.f32 %v1802_v3, %v1813_v18 }
 0x9f7   : > { %v1818_v22 = vmul.f32 1.442695, %v1815_v19 }
 0x9f8   : > { %v1881_v23 = vpop.permute.xlu1 %1880 }
 0x9f9   : > { %3688 = vpow2.f32 %v1818_v22  ;;  %v1886_v24 = vsel %vm1172_vm2, %v1881_v23, 0  ;;  %v3715_v22 = vld [vmem:[%s4197_s19 + $0x8] sm:$0xff]  ;;  %v3578_v23 = vld [vmem:[%s4142_s10 + $0xe0] ss:$16 sps:$4 sm:$0xff]  }
 0x9fa   : > { %3396 = vmatpush3.bf16.msra.mxu1 %v1886_v24  ;;  %v3580_v24 = vld [vmem:[%s4142_s10 + $0xe4] ss:$16 sps:$4 sm:$0xff]  }
 0x9fb   : > { %2330 = vmatprep.subr.bf16.mxu1 %v3580_v24  ;;  %v3628_v24 = vld [vmem:[%s4672_s6 + $0x38] sm:$0xff]  }
 0x9fc   : > { %v3687_v51 = vpop.eup %3686  ;;  %v3525_v48 = vpop.permute.xlu1 %3524 }
 0x9fd   : > { %v1820_v25 = vsel %vm1144_vm3, %v3687_v51, 0.0  ;;  %v3527_v50 = vunpack.i.h.bf16 %v3525_v48  ;;  %v3526_v52 = vunpack.i.l.bf16 %v3525_v48  ;;  %v3619_v48 = vld [vmem:[%s4142_s10 + $0x2c] ss:$16 sps:$4 sm:$0xff]  }
 0x9fe   : > { %1821 = vadd.xlane.f32.xlu0 %v1820_v25  ;;  %v3583_v25 = vld [vmem:[%s4142_s10 + $0xec] ss:$16 sps:$4 sm:$0xff]  }
 0x9ff   : > { %v1953_v58 = vsel %vm1051_vm1, %v4344_v11, %v3527_v50  ;;  %v1952_v60 = vsel %vm1051_vm1, %v4342_v4, %v3526_v52  ;;  %v3110_v11 = vld [vmem:[%s4671_s5] ss:$0 sm:$0xff]  ;;  %v3617_v50 = vld [vmem:[%s4142_s10 + $0x28] ss:$16 sps:$4 sm:$0xff]   ;;  %v3622_v52 = vld [vmem:[%s4142_s10 + $0x4] ss:$16 sps:$4 sm:$0xff]  }
 0xa00   : > { %v3530_v49 = vpop.permute.xlu1 %3529 }
 0xa01   : > { %v3532_v53 = vunpack.i.h.bf16 %v3530_v49 }
 0xa03   : > { %v1956_v3 = vsel %vm1954_vm4, %v1953_v58, %v3532_v53  ;;  %v3625_v53 = vld [vmem:[%s4142_s10 + $0xc] ss:$16 sps:$4 sm:$0xff]  }
 0xa06   : > { %v3689_v54 = vpop.eup %3688 }
 0xa07   : > { %v1823_v0 = vsel %vm1144_vm3, %v3689_v54, 0.0 }
 0xa08   : > { %1824 = vadd.xlane.f32.xlu0 %v1823_v0 }
 0xa1e   : > { %1832 = vrot.lane.b32.xlu0 %v4295_v20, %s3919_s20 }
 0xa87   : > { %v1822_v2 = vpop.xlane.xlu0 %1821 }
 0xa88   : > { %3690 = vrcp.f32 %v1822_v2 }
 0xa91   : > { %v1825_v26 = vpop.xlane.xlu0 %1824 }
 0xa92   : > { %3692 = vrcp.f32 %v1825_v26 }
 0xa95   : > { %v3691_v27 = vpop.eup %3690  ;;  %v1833_v28 = vpop.permute.xlu0 %1832 }
 0xa96   : > { %v1838_v8 = vsel %vm1172_vm2, %v1833_v28, 0  ;;  %v1828_v15 = vmul.f32 %v3691_v27, %v3687_v51  ;;  %v3581_v51 = vld [vmem:[%s4142_s10 + $0xe8] ss:$16 sps:$4 sm:$0xff]  }
 0xa97   : > { %3390 = vmatpush3.bf16.msra.mxu0 %v1838_v8 }
 0xa98   : > { %v1830_v30 = vpack.c.bf16 %v1828_v15, %v1828_v15  ;;  %3401 = vmatprep.subr.bf16.mxu0 %v3914_v6 }
 0xa9a   : > { %3392 = vmatmul.mubr.msk.bf16.vlgmr.msra.gmra.mxu0 %vm1144_vm3, %v1830_v30  ;;  %v3586_v30 = vld [vmem:[%s4142_s10 + $0xc4] ss:$16 sps:$4 sm:$0xff]  }
 0xa9b   : > { %3417 = vmatprep.mubr.msk.bf16.mxu0 %vm3916_vm0, %v3914_v6  ;;  %3402 = vmatpush3.bf16.msra.mxu0 %v3570_v32  ;;  %v3592_v32 = vld [vmem:[%s4142_s10 + $0xa4] ss:$16 sps:$4 sm:$0xff]  }
 0xa9c   : > { %3403 = vmatprep.subr.bf16.mxu0 %v3914_v6 }
 0xa9f   : > { %v3693_v20 = vpop.eup %3692  ;;  %3404 = vmatpush3.bf16.msra.mxu0 %v3571_v33  ;;  %v3595_v33 = vld [vmem:[%s4142_s10 + $0xac] ss:$16 sps:$4 sm:$0xff]  }
 0xaa0   : > { %v1829_v21 = vmul.f32 %v3693_v20, %v3689_v54  ;;  %3405 = vmatprep.subr.bf16.mxu0 %v3914_v6  ;;  %v3589_v20 = vld [vmem:[%s4142_s10 + $0xcc] ss:$16 sps:$4 sm:$0xff]  }
 0xaa2   : > { %v1831_v31 = vpack.c.bf16 %v1829_v21, %v1829_v21  ;;  %v3584_v21 = vld [vmem:[%s4142_s10 + $0xc0] ss:$16 sps:$4 sm:$0xff]  }
 0xaa3   : > { %3406 = vmatpush3.bf16.msra.mxu0 %v3572_v34  ;;  %v3590_v34 = vld [vmem:[%s4142_s10 + $0xa0] ss:$16 sps:$4 sm:$0xff]  }
 0xaa4   : > { %3398 = vmatmul.mubr.msk.bf16.vlgmr.msra.gmra.mxu1 %vm1144_vm3, %v1831_v31  ;;  %3407 = vmatprep.subr.bf16.mxu0 %v3914_v6  ;;  %v3587_v31 = vld [vmem:[%s4142_s10 + $0xc8] ss:$16 sps:$4 sm:$0xff]  }
 0xaa5   : > { %2362 = vmatprep.mubr.bf16.mxu1 %v3915_v29  ;;  %2331 = vmatpush1.bf16.msra.mxu1 %v3578_v23  ;;  %v3627_v23 = vld [vmem:[%s4672_s6 + $0xf8] sm:$0xff]  }
 0xaa6   : > { %2332 = vmatprep.subr.bf16.mxu1 %v3586_v30  ;;  %v3639_v30 = vld [vmem:[%s4672_s6 + $0xe0] sm:$0xff]  }
 0xaa7   : > { %3408 = vmatpush3.bf16.msra.mxu0 %v3573_v35  ;;  %v3593_v35 = vld [vmem:[%s4142_s10 + $0xa8] ss:$16 sps:$4 sm:$0xff]  }
 0xaa8   : > { %3409 = vmatprep.subr.bf16.mxu0 %v3914_v6 }
 0xaa9   : > { %2333 = vmatpush1.bf16.msra.mxu1 %v3584_v21  ;;  %v3641_v21 = vld [vmem:[%s4672_s6 + $0xa0] sm:$0xff]  }
 0xaaa   : > { %2334 = vmatprep.subr.bf16.mxu1 %v3592_v32  ;;  %v3643_v32 = vld [vmem:[%s4672_s6 + $0xd8] sm:$0xff]  }
 0xaab   : > { %3410 = vmatpush3.bf16.msra.mxu0 %v3574_v36  ;;  %v3596_v36 = vld [vmem:[%s4142_s10 + $0x80] ss:$16 sps:$4 sm:$0xff]  }
 0xaac   : > { %3411 = vmatprep.subr.bf16.mxu0 %v3914_v6 }
 0xaad   : > { %2335 = vmatpush1.bf16.msra.mxu1 %v3590_v34  ;;  %v3645_v34 = vld [vmem:[%s4672_s6 + $0x98] sm:$0xff]  }
 0xaaf   : > { %3412 = vmatpush3.bf16.msra.mxu0 %v3575_v37  ;;  %v3598_v37 = vld [vmem:[%s4142_s10 + $0x84] ss:$16 sps:$4 sm:$0xff]  }
 0xab0   : > { %3413 = vmatprep.subr.bf16.mxu0 %v3914_v6  ;;  %2336 = vmatprep.subr.bf16.mxu1 %v3598_v37  ;;  %v3648_v37 = vld [vmem:[%s4672_s6 + $0x10] sm:$0xff]  }
 0xab1   : > { %2337 = vmatpush1.bf16.msra.mxu1 %v3596_v36  ;;  %v3647_v36 = vld [vmem:[%s4672_s6 + $0xd0] sm:$0xff]  }
 0xab3   : > { %3414 = vmatpush3.bf16.msra.mxu0 %v3576_v38  ;;  %v3599_v38 = vld [vmem:[%s4142_s10 + $0x88] ss:$16 sps:$4 sm:$0xff]  }
 0xab4   : > { %3415 = vmatprep.subr.bf16.mxu0 %v3914_v6  ;;  %v3531_v6 = vunpack.i.l.bf16 %v3530_v49  ;;  %v3614_v49 = vld [vmem:[%s4142_s10 + $0x20] ss:$16 sps:$4 sm:$0xff]  }
 0xab6   : > { %v1955_v1 = vsel %vm1954_vm4, %v1952_v60, %v3531_v6  ;;  %v3620_v6 = vld [vmem:[%s4142_s10] ss:$16 sps:$4 sm:$0xff]  }
 0xab7   : > { %3416 = vmatpush3.bf16.msra.mxu0 %v3577_v16  ;;  %v3604_v16 = vld [vmem:[%s4142_s10 + $0x64] ss:$16 sps:$4 sm:$0xff]  }
 0xab8   : > { %2373 = vmatprep.subr.bf16.mxu0 %v3583_v25  ;;  %2338 = vmatprep.subr.bf16.mxu1 %v3604_v16  ;;  %v3630_v25 = vld [vmem:[%s4672_s6 + $0x70] sm:$0xff]   ;;  %v3651_v16 = vld [vmem:[%s4672_s6 + $0xc8] sm:$0xff]  }
 0xb5a   : > { %v1874_v39 = vpop.f32.mrf.mxu0 }
 0xb5c   : > { %v3393_v40 = vpop.f32.mrf.mxu0 }
 0xb5d   : > { %v3607_v40 = vld [vmem:[%s4142_s10 + $0x6c] ss:$16 sps:$4 sm:$0xff]  }
 0xb5e   : > { %v1877_v41 = vpop.f32.mrf.mxu0 }
 0xb5f   : > { %v3602_v41 = vld [vmem:[%s4142_s10 + $0x60] ss:$16 sps:$4 sm:$0xff]  }
 0xb60   : > { %v3394_v42 = vpop.f32.mrf.mxu0  ;;  %2339 = vmatpush1.bf16.msra.mxu1 %v3602_v41  ;;  %v3653_v41 = vld [vmem:[%s4672_s6 + $0x88] sm:$0xff]  }
 0xb61   : > { %v3605_v42 = vld [vmem:[%s4142_s10 + $0x68] ss:$16 sps:$4 sm:$0xff]  }
 0xb64   : > { %v1922_v43 = vpop.f32.mrf.mxu1 }
 0xb65   : > { %v3533_v44 = vpack.i.bf16 %v1922_v43, %v1874_v39  ;;  %v3601_v39 = vld [vmem:[%s4142_s10 + $0x8c] ss:$16 sps:$4 sm:$0xff]   ;;  %v3610_v43 = vld [vmem:[%s4142_s10 + $0x44] ss:$16 sps:$4 sm:$0xff]  }
 0xb66   : > { %v3399_v45 = vpop.f32.mrf.mxu1  ;;  %2340 = vmatprep.subr.bf16.mxu1 %v3610_v43  ;;  %v3655_v43 = vld [vmem:[%s4672_s6 + $0xc0] sm:$0xff]  }
 0xb67   : > { %3534 = vrot.lane.b32.xlu0 %v3533_v44, %s3917_s30  ;;  %v3613_v44 = vld [vmem:[%s4142_s10 + $0x4c] ss:$16 sps:$4 sm:$0xff]   ;;  %v3608_v45 = vld [vmem:[%s4142_s10 + $0x40] ss:$16 sps:$4 sm:$0xff]  }
 0xb68   : > { %v1925_v46 = vpop.f32.mrf.mxu1  ;;  %2341 = vmatpush1.bf16.msra.mxu1 %v3608_v45  ;;  %v3657_v45 = vld [vmem:[%s4672_s6 + $0x80] sm:$0xff]  }
 0xb69   : > { %v3611_v46 = vld [vmem:[%s4142_s10 + $0x48] ss:$16 sps:$4 sm:$0xff]  }
 0xb6a   : > { %v3400_v47 = vpop.f32.mrf.mxu1 }
 0xb6b   : > { %v3616_v47 = vld [vmem:[%s4142_s10 + $0x24] ss:$16 sps:$4 sm:$0xff]  }
 0xb6c   : > { %2342 = vmatprep.subr.bf16.mxu1 %v3616_v47  ;;  %v2164_v47 = vsub.s32 3, %v4265_v56 }
 0xb6d   : > { %2343 = vmatpush1.bf16.msra.mxu1 %v3614_v49 }
 0xb6e   : > { %2344 = vmatprep.subr.bf16.mxu1 %v3622_v52 }
 0xb71   : > { %2345 = vmatpush1.bf16.msra.mxu1 %v3620_v6 }
 0xbd9   : > { %v3535_v55 = vpop.permute.xlu0 %3534 }
 0xbda   : > { %v3537_v61 = vunpack.i.h.bf16 %v3535_v55  ;;  %v3536_v62 = vunpack.i.l.bf16 %v3535_v55  ;;  %v3623_v55 = vld [vmem:[%s4142_s10 + $0x8] ss:$16 sps:$4 sm:$0xff]  }
 0xbdc   : > { %v1959_v5 = vsel %vm1957_vm5, %v1956_v3, %v3537_v61  ;;  %v1958_v7 = vsel %vm1957_vm5, %v1955_v1, %v3536_v62 }
 0xbdd   : > { %v1960_v9 = vpack.c.bf16 %v1959_v5, %v1958_v7 }
 0xbdf   : > { %3418 = vmatmul.mubr.bf16.vlgmr.msra.gmra.mxu0 %v1960_v9  ;;  %v3119_v9 = vld [vmem:[%s714_s14] ss:$0 sm:$0xff] }
 0xbe0   : > { %2405 = vmatprep.mubr.bf16.mxu0 %v3915_v29  ;;  %2374 = vmatpush1.bf16.msra.mxu0 %v3581_v51  ;;  %v3629_v51 = vld [vmem:[%s4672_s6 + $0xb8] sm:$0xff]  }
 0xbe1   : > { %2375 = vmatprep.subr.bf16.mxu0 %v3589_v20  ;;  %v3640_v20 = vld [vmem:[%s4672_s6 + $0x20] sm:$0xff]  }
 0xbe4   : > { %2376 = vmatpush1.bf16.msra.mxu0 %v3587_v31  ;;  %v3642_v31 = vld [vmem:[%s4672_s6 + $0x58] sm:$0xff]  }
 0xbe5   : > { %2377 = vmatprep.subr.bf16.mxu0 %v3595_v33  ;;  %v3644_v33 = vld [vmem:[%s4672_s6 + $0x18] sm:$0xff]  }
 0xbe8   : > { %2378 = vmatpush1.bf16.msra.mxu0 %v3593_v35  ;;  %v3646_v35 = vld [vmem:[%s4672_s6 + $0x50] sm:$0xff]  }
 0xbe9   : > { %2379 = vmatprep.subr.bf16.mxu0 %v3601_v39  ;;  %v3650_v39 = vld [vmem:[%s4672_s6 + $0x48] sm:$0xff]  }
 0xbec   : > { %2380 = vmatpush1.bf16.msra.mxu0 %v3599_v38  ;;  %v3649_v38 = vld [vmem:[%s4672_s6 + $0x90] sm:$0xff]  }
 0xbed   : > { %2381 = vmatprep.subr.bf16.mxu0 %v3607_v40  ;;  %v3652_v40 = vld [vmem:[%s4672_s6 + $0x8] sm:$0xff]  }
 0xbf0   : > { %2382 = vmatpush1.bf16.msra.mxu0 %v3605_v42  ;;  %v3654_v42 = vld [vmem:[%s4672_s6 + $0x40] sm:$0xff]  }
 0xbf1   : > { %2383 = vmatprep.subr.bf16.mxu0 %v3613_v44  ;;  %v3656_v44 = vld [vmem:[%s4672_s6] sm:$0xff]  }
 0xbf4   : > { %2384 = vmatpush1.bf16.msra.mxu0 %v3611_v46  ;;  %v2148_v46 = vld [vmem:[%s4188_s3] sm:$0xf] }
 0xbf5   : > { %2385 = vmatprep.subr.bf16.mxu0 %v3619_v48  ;;  %v2153_v48 = vrot.slane %v2148_v46, %v820_v63  ;;  %v2161_v49 = vrot.slane %v2148_v46, %v828_v59  ;;  %v2165_v52 = vrot.slane %v2148_v46, %v2164_v47 }
 0xbf8   : > { %2386 = vmatpush1.bf16.msra.mxu0 %v3617_v50  ;;  %v2157_v50 = vrot.slane %v2148_v46, %v824_v57 }
 0xbf9   : > { %2387 = vmatprep.subr.bf16.mxu0 %v3625_v53 }
 0xbfc   : > { %2388 = vmatpush1.bf16.msra.mxu0 %v3623_v55 }
 0xbfd   : > { %3263 = vmatprep.subr.bf16.mxu0 %v3627_v23 }
 0xc9f   : > { %v2066_v4 = vpop.f32.mrf.mxu0 }
 0xca0   : > { %v2067_v10 = vadd.f32 %v3110_v11, %v2066_v4 }
 0xca1   : > { %v3419_v12 = vpop.f32.mrf.mxu0 }
 0xca2   : > { %v4471_v14 = vadd.f32 %v3714_v13, %v2067_v10  ;;  %v3120_v12 = vld [vmem:[%s717_s26] ss:$0 sm:$0xff] }
 0xca3   : > { %v2069_v17 = vpop.f32.mrf.mxu0 }
 0xca4   : > { %v2070_v18 = vadd.f32 %v3110_v11, %v2069_v17  ;;  %2077 = vadd.xlane.f32.xlu1 %v4471_v14 }
 0xca5   : > { %v3420_v19 = vpop.f32.mrf.mxu0 }
 0xca6   : > { %v4475_v29 = vadd.f32 %v3715_v22, %v2070_v18  ;;  %v3626_v22 = vld [vmem:[%s4672_s6 + $0x78] sm:$0xff]  }
 0xca7   : > { %3241 = vmatprep.subr.bf16.mxu1 %v3626_v22 }
 0xca8   : > { %2079 = vadd.xlane.f32.xlu0 %v4475_v29 }
 0xd2d   : > { %v2078_v54 = vpop.xlane.xlu1 %2077 }
 0xd2e   : > { %v2081_v0 = vmul.f32 0.0078125, %v2078_v54  ;;  %v3631_v54 = vld [vmem:[%s4672_s6 + $0xf0] sm:$0xff]  }
 0xd30   : > { %v4483_v2 = vsub.f32 %v4471_v14, %v2081_v0  ;;  %v3632_v0 = vld [vmem:[%s4672_s6 + $0x30] sm:$0xff]  }
 0xd31   : > { %v2080_v26 = vpop.xlane.xlu0 %2079 }
 0xd32   : > { %v2082_v27 = vmul.f32 0.0078125, %v2080_v26  ;;  %v2085_v28 = vmul.f32 %v4483_v2, %v4483_v2  ;;  %v3634_v26 = vld [vmem:[%s4672_s6 + $0x68] sm:$0xff]  }
 0xd34   : > { %v4488_v8 = vsub.f32 %v4475_v29, %v2082_v27  ;;  %2087 = vadd.xlane.f32.xlu0 %v2085_v28  ;;  %v3635_v27 = vld [vmem:[%s4672_s6 + $0xe8] sm:$0xff]  }
 0xd35   : > { %v3636_v28 = vld [vmem:[%s4672_s6 + $0x28] sm:$0xff]  }
 0xd36   : > { %v2086_v15 = vmul.f32 %v4488_v8, %v4488_v8 }
 0xd38   : > { %2089 = vadd.xlane.f32.xlu0 %v2086_v15  ;;  %v3638_v15 = vld [vmem:[%s4672_s6 + $0x60] sm:$0xff]  }
 0xdbd   : > { %v2088_v58 = vpop.xlane.xlu0 %2087 }
 0xdbe   : > { %v2091_v60 = vmul.f32 0.0078125, %v2088_v58 }
 0xdc0   : > { %v2093_v61 = vadd.f32 1e-05, %v2091_v60 }
 0xdc1   : > { %v2090_v62 = vpop.xlane.xlu0 %2089 }
 0xdc2   : > { %3694 = vrsqrt.f32 %v2093_v61  ;;  %v2092_v1 = vmul.f32 0.0078125, %v2090_v62 }
 0xdc4   : > { %v2094_v3 = vadd.f32 1e-05, %v2092_v1 }
 0xdc6   : > { %3696 = vrsqrt.f32 %v2094_v3 }
 0xdcf   : > { %v3695_v5 = vpop.eup %3694 }
 0xdd0   : > { %v2097_v7 = vmul.f32 %v3695_v5, %v4483_v2  ;;  %v3633_v2 = vld [vmem:[%s4672_s6 + $0xb0] sm:$0xff]  }
 0xdd2   : > { %v2105_v10 = vmul.f32 %v3119_v9, %v2097_v7 }
 0xdd3   : > { %v3697_v11 = vpop.eup %3696 }
 0xdd4   : > { %v2098_v4 = vmul.f32 %v3697_v11, %v4488_v8  ;;  %v2113_v17 = vadd.f32 %v3120_v12, %v2105_v10  ;;  %v3637_v8 = vld [vmem:[%s4672_s6 + $0xa8] sm:$0xff]  }
 0xdd6   : > { %v2106_v13 = vmul.f32 %v3119_v9, %v2098_v4 }
 0xdd8   : > { %v2114_v18 = vadd.f32 %v3120_v12, %v2106_v13 }
 0xdda   : > { %v2115_v19 = vpack.c.bf16 %v2114_v18, %v2113_v17 }
 0xddc   : > { %2363 = vmatmul.mubr.bf16.vlgmr.msra.gmra.mxu1 %v2115_v19  ;;  %2406 = vmatmul.mubr.bf16.vlgmr.msra.gmra.mxu0 %v2115_v19 }
 0xddd   : > { %3242 = vmatpush3.bf16.msra.mxu1 %v3628_v24  ;;  %3264 = vmatpush3.bf16.msra.mxu0 %v3629_v51 }
 0xdde   : > { %3243 = vmatprep.subr.bf16.mxu1 %v3630_v25  ;;  %3265 = vmatprep.subr.bf16.mxu0 %v3631_v54 }
 0xde1   : > { %3244 = vmatpush3.bf16.msra.mxu1 %v3632_v0  ;;  %3266 = vmatpush3.bf16.msra.mxu0 %v3633_v2 }
 0xde2   : > { %3245 = vmatprep.subr.bf16.mxu1 %v3634_v26  ;;  %3267 = vmatprep.subr.bf16.mxu0 %v3635_v27 }
 0xde5   : > { %3246 = vmatpush3.bf16.msra.mxu1 %v3636_v28  ;;  %3268 = vmatpush3.bf16.msra.mxu0 %v3637_v8 }
 0xde6   : > { %3247 = vmatprep.subr.bf16.mxu1 %v3638_v15  ;;  %3269 = vmatprep.subr.bf16.mxu0 %v3639_v30 }
 0xde9   : > { %3248 = vmatpush3.bf16.msra.mxu1 %v3640_v20  ;;  %3270 = vmatpush3.bf16.msra.mxu0 %v3641_v21 }
 0xdea   : > { %3249 = vmatprep.subr.bf16.mxu1 %v3642_v31  ;;  %3271 = vmatprep.subr.bf16.mxu0 %v3643_v32 }
 0xded   : > { %3250 = vmatpush3.bf16.msra.mxu1 %v3644_v33  ;;  %3272 = vmatpush3.bf16.msra.mxu0 %v3645_v34 }
 0xdee   : > { %3251 = vmatprep.subr.bf16.mxu1 %v3646_v35  ;;  %3273 = vmatprep.subr.bf16.mxu0 %v3647_v36 }
 0xdf1   : > { %3252 = vmatpush3.bf16.msra.mxu1 %v3648_v37  ;;  %3274 = vmatpush3.bf16.msra.mxu0 %v3649_v38 }
 0xdf2   : > { %3253 = vmatprep.subr.bf16.mxu1 %v3650_v39  ;;  %3275 = vmatprep.subr.bf16.mxu0 %v3651_v16 }
 0xdf5   : > { %3254 = vmatpush3.bf16.msra.mxu1 %v3652_v40  ;;  %3276 = vmatpush3.bf16.msra.mxu0 %v3653_v41 }
 0xdf6   : > { %3255 = vmatprep.subr.bf16.mxu1 %v3654_v42  ;;  %3277 = vmatprep.subr.bf16.mxu0 %v3655_v43 }
 0xdf9   : > { %3256 = vmatpush3.bf16.msra.mxu1 %v3656_v44  ;;  %3278 = vmatpush3.bf16.msra.mxu0 %v3657_v45 }
 0xe9c   : > { %v2364_v53 = vpop.f32.mrf.mxu1  ;;  %v2407_v6 = vpop.f32.mrf.mxu0 }
 0xe9d   : > { %v2365_v55 = vadd.f32 %v2364_v53, %v2153_v48  ;;  %v2408_v58 = vadd.f32 %v2407_v6, %v2161_v49  ;;  %v3153_v53 = vld [vmem:[%s724_s9] ss:$0 sm:$0xff] }
 0xe9e   : > { %v2366_v60 = vpop.f32.mrf.mxu1  ;;  %v2409_v61 = vpop.f32.mrf.mxu0 }
 0xe9f   : > { %v2416_v62 = vmul.f32 0.851, %v2365_v55  ;;  %v2418_v1 = vmul.f32 0.851, %v2408_v58  ;;  %v2367_v3 = vadd.f32 %v2366_v60, %v2157_v50  ;;  %v2410_v5 = vadd.f32 %v2409_v61, %v2165_v52 }
 0xea0   : > { %v2368_v7 = vpop.f32.mrf.mxu1  ;;  %v2411_v9 = vpop.f32.mrf.mxu0 }
 0xea1   : > { %3698 = vtanh.f32 %v2416_v62  ;;  %v2417_v63 = vmul.f32 0.851, %v2367_v3  ;;  %v2419_v11 = vmul.f32 0.851, %v2410_v5  ;;  %v2369_v59 = vadd.f32 %v2368_v7, %v2153_v48 }
 0xea2   : > { %3700 = vtanh.f32 %v2418_v1  ;;  %v2412_v56 = vadd.f32 %v2411_v9, %v2161_v49  ;;  %v2370_v57 = vpop.f32.mrf.mxu1  ;;  %v2413_v4 = vpop.f32.mrf.mxu0 }
 0xea3   : > { %3702 = vtanh.f32 %v2417_v63  ;;  %v2420_v10 = vmul.f32 0.851, %v2369_v59  ;;  %v2371_v12 = vadd.f32 %v2370_v57, %v2157_v50  ;;  %v2414_v13 = vadd.f32 %v2413_v4, %v2165_v52 }
 0xea4   : > { %3704 = vtanh.f32 %v2419_v11  ;;  %v2422_v17 = vmul.f32 0.851, %v2412_v56 }
 0xea5   : > { %3706 = vtanh.f32 %v2420_v10  ;;  %v2421_v18 = vmul.f32 0.851, %v2371_v12  ;;  %v2423_v19 = vmul.f32 0.851, %v2414_v13 }
 0xea6   : > { %3708 = vtanh.f32 %v2422_v17 }
 0xea7   : > { %3710 = vtanh.f32 %v2421_v18 }
 0xea8   : > { %3712 = vtanh.f32 %v2423_v19 }
 0xeae   : > { %v3699_v22 = vpop.eup %3698 }
 0xeaf   : > { %v3701_v23 = vpop.eup %3700  ;;  %v2432_v0 = vadd.f32 1.0, %v3699_v22 }
 0xeb0   : > { %v3703_v24 = vpop.eup %3702  ;;  %v2434_v27 = vadd.f32 1.0, %v3701_v23 }
 0xeb1   : > { %v3705_v51 = vpop.eup %3704  ;;  %v2433_v25 = vadd.f32 1.0, %v3703_v24  ;;  %v2440_v32 = vmul.f32 0.5, %v2432_v0 }
 0xeb2   : > { %v3707_v54 = vpop.eup %3706  ;;  %v2435_v2 = vadd.f32 1.0, %v3705_v51  ;;  %v2442_v36 = vmul.f32 0.5, %v2434_v27 }
 0xeb3   : > { %v3709_v26 = vpop.eup %3708  ;;  %v2436_v28 = vadd.f32 1.0, %v3707_v54  ;;  %v2441_v20 = vmul.f32 0.5, %v2433_v25  ;;  %v2448_v42 = vmul.f32 %v2440_v32, %v2365_v55 }
 0xeb4   : > { %v3711_v8 = vpop.eup %3710  ;;  %v2438_v15 = vadd.f32 1.0, %v3709_v26  ;;  %v2443_v33 = vmul.f32 0.5, %v2435_v2  ;;  %v2450_v45 = vmul.f32 %v2442_v36, %v2408_v58 }
 0xeb5   : > { %v3713_v30 = vpop.eup %3712  ;;  %v2444_v21 = vmul.f32 0.5, %v2436_v28  ;;  %v2437_v31 = vadd.f32 1.0, %v3711_v8  ;;  %v2449_v16 = vmul.f32 %v2441_v20, %v2367_v3 }
 0xeb6   : > { %v2446_v34 = vmul.f32 0.5, %v2438_v15  ;;  %v2439_v35 = vadd.f32 1.0, %v3713_v30  ;;  %v2451_v43 = vmul.f32 %v2443_v33, %v2410_v5 }
 0xeb7   : > { %v2445_v37 = vmul.f32 0.5, %v2437_v31  ;;  %v2452_v38 = vmul.f32 %v2444_v21, %v2369_v59 }
 0xeb8   : > { %v2447_v39 = vmul.f32 0.5, %v2439_v35  ;;  %v2454_v40 = vmul.f32 %v2446_v34, %v2412_v56 }
 0xeb9   : > { %v2453_v41 = vmul.f32 %v2445_v37, %v2371_v12  ;;  %v2456_v47 = vpack.c.bf16 %v2452_v38, %v2448_v42 }
 0xeba   : > { %v2455_v44 = vmul.f32 %v2447_v39, %v2414_v13  ;;  %v2458_v49 = vpack.c.bf16 %v2454_v40, %v2450_v45 }
 0xebb   : > { %v2457_v46 = vpack.c.bf16 %v2453_v41, %v2449_v16 }
 0xebc   : > { %v2459_v48 = vpack.c.bf16 %v2455_v44, %v2451_v43 }
 0xebd   : > { %2755 = vmatprep.mubr.bf16.mxu1 %v2457_v46 }
 0xebe   : > { %2796 = vmatprep.mubr.bf16.mxu0 %v2459_v48  ;;  %2756 = vmatmul.mubr.bf16.vlgmr.msra.gmra.mxu1 %v2456_v47 }
 0xebf   : > { %2797 = vmatmul.mubr.bf16.vlgmr.msra.gmra.mxu0 %v2458_v49 }
 0xf7e   : > { %v3257_v50 = vpop.f32.mrf.mxu1 }
 0xf7f   : > { %v3279_v52 = vpop.f32.mrf.mxu0 }
 0xf80   : > { %v3258_v6 = vpop.f32.mrf.mxu1 }
 0xf81   : > { %v3259_v55 = vadd.f32 %v3258_v6, %v3257_v50  ;;  %v3280_v58 = vpop.f32.mrf.mxu0 }
 0xf82   : > { %v3260_v60 = vpop.f32.mrf.mxu1  ;;  %v3281_v62 = vadd.f32 %v3280_v58, %v3279_v52 }
 0xf83   : > { %v2758_v61 = vadd.f32 %v3259_v55, %v3153_v53  ;;  %v3282_v1 = vpop.f32.mrf.mxu0 }
 0xf84   : > { %v3261_v3 = vpop.f32.mrf.mxu1 }
 0xf85   : > { %v2799_v5 = vadd.f32 %v3281_v62, %v2758_v61  ;;  %v3262_v7 = vadd.f32 %v3261_v3, %v3260_v60  ;;  %v3283_v9 = vpop.f32.mrf.mxu0 }
 0xf86   : > { %v3284_v59 = vadd.f32 %v3283_v9, %v3282_v1 }
 0xf87   : > { %v2805_v63 = vadd.f32 %v2799_v5, %v4471_v14  ;;  %v2761_v11 = vadd.f32 %v3262_v7, %v3153_v53 }
 0xf89   : > { %2807 = vst [vmem:[%s4197_s19] sm:$0xff] %v2805_v63  ;;  %v2802_v56 = vadd.f32 %v3284_v59, %v2761_v11 }
 0xf8b   : > { %v2806_v57 = vadd.f32 %v2802_v56, %v4475_v29 }
 0xf8d   : > { %2808 = vst [vmem:[%s4197_s19 + $0x8] sm:$0xff] %v2806_v57 }
 0xf8e PF: > { %s4676_s18 = sld [smem:[#allocation16_spill]] }
 0xf8f   : > { %s4677_s25 = sld [smem:[#allocation12_spill]] }
 0xf90   : > { %s4678_s26 = sld [smem:[#allocation13_spill]] }
 0xf91   : > { %s4679_s27 = sld [smem:[#allocation19_spill]] }
 0xf92   : > { %s4680_s28 = sld [smem:[#allocation14_spill]] }
 0xf93   : > { %s4681_s29 = sld [smem:[#allocation15_spill]] }
 0xf94   : > { %s32_s15 = sadd.s32 1, %s4676_s18   ;;  %s4682_s30 = sld [smem:[#allocation17_spill]] }
 0xf95   : > { %p29_p7 = scmp.ge.s32.totalorder %s32_s15, 6   ;;  %s4683_s14 = sld [smem:[#allocation18_spill]] }
 0xf97   :  { %31 = sbr.rel (!%p29_p7) target bundleno = 22 (0x16), region = 180 }
 0xf9c   :  { %2831 = vsyncpa [#allocation3], 1 }
 0xf9d   :  { %2833 = vsyncpa [#allocation3 + $0x1], 1 }
 0xf9e   :  { %2834 = vsyncpa [#allocation5], 1 }
 0xf9f   :  { %2836 = vsyncpa [#allocation5 + $0x1], 1 }
 0xfa0   :  { %2837 = vsyncpa [#allocation8], 1 }
 0xfa1   :  { %2839 = vsyncpa [#allocation8 + $0x1], 1 }

</bundles_post_ra>
